<compile_context>
chip_gen: v7x
topology: tpu7x:2x2x1
jax: 0.10.0
libtpu: 0.0.40
codegen_flags: <defaults>
</compile_context>

<pallas_src>
import functools
import math

import jax
import jax.numpy as jnp
import numpy as np
from jax.experimental import pallas as pl
from jax.experimental.pallas import tpu as pltpu

LN_EPS = 1e-5  # PyTorch nn.LayerNorm default


# ----------------------------------------------------------------------------
# shared math helpers (used both inside the Pallas kernel and in the reference)
# ----------------------------------------------------------------------------
def _layer_norm(x, g, b):
    mu = jnp.mean(x, axis=-1, keepdims=True)
    var = jnp.mean(jnp.square(x - mu), axis=-1, keepdims=True)
    return (x - mu) * jax.lax.rsqrt(var + LN_EPS) * g + b


def _gelu(x):
    # exact (erf-based) GELU, matching nn.GELU() default
    return 0.5 * x * (1.0 + jax.lax.erf(x * (1.0 / math.sqrt(2.0))))


# ----------------------------------------------------------------------------
# fused forward kernel
# ----------------------------------------------------------------------------
def _fused_forward_kernel(
    patches_ref,   # (Bt, P, patch_size)  f32   this batch tile's patches
    freq_ref,      # (Bt, 1, F)           f32   this batch tile's frequency
    proj_w_ref,    # (patch_size, E)      bf16
    freq_w_ref,    # (F, E)               bf16  conv folded into the freq linear
    embed_ref,     # (7 + S, E)           f32   packed embedding / cls vectors
    cls_w_ref,     # (E, C)               f32
    cls_b_ref,     # (1, C)               f32
    wqkv_ref,      # (1, E, 3E)           bf16  fused QKV (scale folded into Wq)
    wo_ref,        # (1, E, E)            bf16
    w1_ref,        # (1, E, M)            bf16
    w2_ref,        # (1, M, E)            bf16
    vec_ref,       # (1, 8, Wmax)         f32   packed per-layer LN params+biases
    o_ref,         # (Bt, 1, C)           f32   logits for this batch tile
    seq_ref,       # VMEM scratch (Bt*S, E) f32  sequence resident across layers
    *, num_heads, batch_tile, seq_len,
):
    l = pl.program_id(1)
    num_l = pl.num_programs(1)
    Bt = batch_tile
    S = seq_len
    _, E = seq_ref.shape
    P = S - 2
    H = num_heads
    d = E // H
    M = w1_ref.shape[2]
    ps = patches_ref.shape[2]
    F = freq_ref.shape[2]

    # embed_ref row layout: 0 class_token, 1 time_token, 2 freq_token, 3 proj_b,
    #                       4 folded freq bias, 5 cls_ln_g, 6 cls_ln_b, 7.. pos_embed

    # ---- prologue: run ONLY on the first layer step (pl.when) ----
    @pl.when(l == 0)
    def _prologue():
        ev = embed_ref[...]
        pos = ev[7:7 + S, :]
        # one batched patch-projection matmul for the whole batch tile
        pflat = patches_ref[...].reshape(Bt * P, ps).astype(jnp.bfloat16)
        proj = jnp.dot(pflat, proj_w_ref[...],
                       preferred_element_type=jnp.float32) + ev[3:4, :]     # (Bt*P, E)
        fflat = freq_ref[...].reshape(Bt, F).astype(jnp.bfloat16)
        femb = jnp.dot(fflat, freq_w_ref[...],
                       preferred_element_type=jnp.float32) + ev[4:5, :]     # (Bt, E)
        for b in range(Bt):
            r0 = b * S
            # sequence = [class_token, time-patch tokens, frequency token] + pos
            seq_ref[r0:r0 + 1, :] = ev[0:1, :] + pos[0:1, :]
            seq_ref[r0 + 1:r0 + 1 + P, :] = (proj[b * P:(b + 1) * P, :]
                                             + ev[1:2, :] + pos[1:1 + P, :])
            seq_ref[r0 + 1 + P:r0 + S, :] = (femb[b:b + 1, :]
                                             + ev[2:3, :] + pos[1 + P:S, :])
        # embedding_dropout: identity (eval mode)

    # ---- transformer encoder layer `l` (pre-norm MSA + pre-norm MLP) ----
    vec = vec_ref[0]                      # (8, Wmax)
    ln1_g = vec[0:1, :E]
    ln1_b = vec[1:2, :E]
    ln2_g = vec[2:3, :E]
    ln2_b = vec[3:4, :E]
    b_o = vec[4:5, :E]
    b_2 = vec[5:6, :E]
    b_qkv = vec[6:7, :3 * E]
    b_1 = vec[7:8, :M]

    x = seq_ref[...]                      # (Bt*S, E) f32
    xn = _layer_norm(x, ln1_g, ln1_b)
    qkv = jnp.dot(xn.astype(jnp.bfloat16), wqkv_ref[0],
                  preferred_element_type=jnp.float32) + b_qkv               # (Bt*S, 3E)
    q = qkv[:, :E]                        # 1/sqrt(d) already folded into Wq / bq
    k = qkv[:, E:2 * E]
    v = qkv[:, 2 * E:]

    # per (batch element, head) attention; contexts lane-concatenated so the
    # output projection is ONE full-K (Bt*S,E)x(E,E) matmul.
    ctx_rows = []
    for b in range(Bt):
        rows = slice(b * S, (b + 1) * S)
        heads = []
        for h in range(H):
            cols = slice(h * d, (h + 1) * d)
            s = jnp.dot(q[rows, cols], k[rows, cols].T,
                        preferred_element_type=jnp.float32)                 # (S, S)
            s = s - jnp.max(s, axis=-1, keepdims=True)
            p = jnp.exp(s)
            p = p * pl.reciprocal(jnp.sum(p, axis=-1, keepdims=True), approx=True)
            heads.append(jnp.dot(p, v[rows, cols],
                                 preferred_element_type=jnp.float32))       # (S, d)
        ctx_rows.append(jnp.concatenate(heads, axis=-1) if H > 1 else heads[0])
    ctx = jnp.concatenate(ctx_rows, axis=0) if Bt > 1 else ctx_rows[0]      # (Bt*S, E)

    attn = jnp.dot(ctx.astype(jnp.bfloat16), wo_ref[0],
                   preferred_element_type=jnp.float32)                      # (Bt*S, E)
    x1 = x + attn + b_o                   # residual 1 (out-proj bias added once)

    xn2 = _layer_norm(x1, ln2_g, ln2_b)
    hid = _gelu(jnp.dot(xn2.astype(jnp.bfloat16), w1_ref[0],
                        preferred_element_type=jnp.float32) + b_1)
    mlp = jnp.dot(hid.astype(jnp.bfloat16), w2_ref[0],
                  preferred_element_type=jnp.float32) + b_2
    x2 = x1 + mlp                         # residual 2
    seq_ref[...] = x2

    # ---- classifier epilogue: run ONLY on the last layer step (pl.when) ----
    @pl.when(l == num_l - 1)
    def _epilogue():
        ev = embed_ref[...]
        cls_tok = (jnp.concatenate([x2[b * S:b * S + 1, :] for b in range(Bt)], axis=0)
                   if Bt > 1 else x2[0:1, :])                               # (Bt, E)
        cls = _layer_norm(cls_tok, ev[5:6, :], ev[6:7, :])
        logits = (jnp.dot(cls, cls_w_ref[...], preferred_element_type=jnp.float32)
                  + cls_b_ref[...])                                         # (Bt, C)
        o_ref[...] = logits[:, None, :]


# ----------------------------------------------------------------------------
# parameter init (deterministic, synthetic)
# ----------------------------------------------------------------------------
def init_params(key, *, patch_size, num_patches, embedding_dim, mlp_size,
                num_layers, num_classes, conv_out):
    keys = iter(jax.random.split(key, 256))
    e, m = embedding_dim, mlp_size

    def nrm(shape, scale=0.02):
        return scale * jax.random.normal(next(keys), shape, jnp.float32)

    params = {
        "class_token": nrm((1, 1, e), 0.2),
        "time_token": nrm((1, 1, e), 0.2),
        "freq_token": nrm((1, 1, e), 0.2),
        "pos_embed": nrm((1, num_patches + 2, e), 0.2),
        # ProjectionModule (assumed Linear(patch_size, E))
        "proj_w": nrm((patch_size, e)),
        "proj_b": jnp.zeros((e,), jnp.float32),
        # ConvLinearModule (assumed Conv1d(1,1,k=2,s=2) + Linear(conv_out, E))
        "conv_w": nrm((1, 1, 2), 0.5),
        "conv_b": 0.1 * jnp.ones((1, 1), jnp.float32),
        "freq_lin_w": nrm((conv_out, e)),
        "freq_lin_b": jnp.zeros((e,), jnp.float32),
        # classifier head
        "cls_ln_g": jnp.ones((e,), jnp.float32),
        "cls_ln_b": jnp.zeros((e,), jnp.float32),
        "cls_w": nrm((e, num_classes)),
        "cls_b": jnp.zeros((num_classes,), jnp.float32),
        "layers": [],
    }
    for _ in range(num_layers):
        params["layers"].append({
            "ln1_g": jnp.ones((1, e), jnp.float32),
            "ln1_b": jnp.zeros((1, e), jnp.float32),
            "wq": nrm((e, e)), "bq": jnp.zeros((1, e), jnp.float32),
            "wk": nrm((e, e)), "bk": jnp.zeros((1, e), jnp.float32),
            "wv": nrm((e, e)), "bv": jnp.zeros((1, e), jnp.float32),
            "wo": nrm((e, e)), "bo": jnp.zeros((1, e), jnp.float32),
            "ln2_g": jnp.ones((1, e), jnp.float32),
            "ln2_b": jnp.zeros((1, e), jnp.float32),
            "w1": nrm((e, m)), "b1": jnp.zeros((1, m), jnp.float32),
            "w2": nrm((m, e)), "b2": jnp.zeros((1, e), jnp.float32),
        })
    return params


# ----------------------------------------------------------------------------
# full forward (single fused Pallas call) and pure-JAX reference
# ----------------------------------------------------------------------------
def seismic_transformer_forward(params, x, frequency, *, patch_size, num_patches,
                                embedding_dim, mlp_size, num_heads, num_layers,
                                num_classes, batch_tile=1):
    B = x.shape[0]
    E, M, C = embedding_dim, mlp_size, num_classes
    P = num_patches
    S = P + 2
    F = frequency.shape[1]
    L = num_layers
    H = num_heads
    d = E // H
    Wmax = max(3 * E, M, E)
    Bt = batch_tile
    assert B % Bt == 0, (B, Bt)

    # PatchEmbedding: [B, len_of_gm, 1] -> [B, P, patch_size]
    patches = x.reshape(B, P, patch_size)
    freq3d = frequency.reshape(B, 1, F)

    # Fold the (linear) stride-2 conv into the frequency Linear at trace time:
    #   W'[2j+t, e] = conv_w[t] * freq_lin_w[j, e]
    #   b'[e]       = conv_b * sum_j freq_lin_w[j, e] + freq_lin_b[e]
    cw = params["conv_w"].reshape(2)
    cb = params["conv_b"].reshape(())
    flw = params["freq_lin_w"]                                   # (F//2, E)
    freq_w = (cw[None, :, None] * flw[:, None, :]).reshape(F, E)
    freq_b = cb * jnp.sum(flw, axis=0) + params["freq_lin_b"]    # (E,)

    # Packed embedding / classifier vectors: one (7+S, E) f32 array.
    embed = jnp.concatenate([
        params["class_token"].reshape(1, E),
        params["time_token"].reshape(1, E),
        params["freq_token"].reshape(1, E),
        params["proj_b"].reshape(1, E),
        freq_b.reshape(1, E),
        params["cls_ln_g"].reshape(1, E),
        params["cls_ln_b"].reshape(1, E),
        params["pos_embed"].reshape(S, E),
    ], axis=0)

    def pad_row(v):
        v = v.reshape(-1)
        return jnp.pad(v, (0, Wmax - v.shape[0]))

    scale = 1.0 / math.sqrt(d)            # folded into Wq / bq (free at runtime)
    layers = params["layers"]
    wqkv = jnp.stack([jnp.concatenate([lp["wq"] * scale, lp["wk"], lp["wv"]], axis=1)
                      for lp in layers]).astype(jnp.bfloat16)    # (L, E, 3E)
    wo = jnp.stack([lp["wo"] for lp in layers]).astype(jnp.bfloat16)   # (L, E, E)
    w1 = jnp.stack([lp["w1"] for lp in layers]).astype(jnp.bfloat16)   # (L, E, M)
    w2 = jnp.stack([lp["w2"] for lp in layers]).astype(jnp.bfloat16)   # (L, M, E)
    vec = jnp.stack([jnp.stack([
        pad_row(lp["ln1_g"]), pad_row(lp["ln1_b"]),
        pad_row(lp["ln2_g"]), pad_row(lp["ln2_b"]),
        pad_row(lp["bo"]), pad_row(lp["b2"]),
        pad_row(jnp.concatenate([lp["bq"].reshape(-1) * scale,
                                 lp["bk"].reshape(-1), lp["bv"].reshape(-1)])),
        pad_row(lp["b1"]),
    ]) for lp in layers])                                        # (L, 8, Wmax)

    proj_w_bf16 = params["proj_w"].astype(jnp.bfloat16)
    freq_w_bf16 = freq_w.astype(jnp.bfloat16)

    kernel = functools.partial(_fused_forward_kernel, num_heads=H,
                               batch_tile=Bt, seq_len=S)

    in_specs = [
        pl.BlockSpec((Bt, P, patch_size), lambda b, l: (b, 0, 0)),  # patches
        pl.BlockSpec((Bt, 1, F), lambda b, l: (b, 0, 0)),           # frequency
        pl.BlockSpec((patch_size, E), lambda b, l: (0, 0)),         # proj_w (bf16)
        pl.BlockSpec((F, E), lambda b, l: (0, 0)),                  # folded freq W
        pl.BlockSpec((7 + S, E), lambda b, l: (0, 0)),              # embed vectors
        pl.BlockSpec((E, C), lambda b, l: (0, 0)),                  # cls_w
        pl.BlockSpec((1, C), lambda b, l: (0, 0)),                  # cls_b
        pl.BlockSpec((1, E, 3 * E), lambda b, l: (l, 0, 0)),        # stacked Wqkv
        pl.BlockSpec((1, E, E), lambda b, l: (l, 0, 0)),            # stacked Wo
        pl.BlockSpec((1, E, M), lambda b, l: (l, 0, 0)),            # stacked W1
        pl.BlockSpec((1, M, E), lambda b, l: (l, 0, 0)),            # stacked W2
        pl.BlockSpec((1, 8, Wmax), lambda b, l: (l, 0, 0)),         # packed vectors
    ]
    out_specs = pl.BlockSpec((Bt, 1, C), lambda b, l: (b, 0, 0))

    # ---- explicit VMEM budget (v5e default scoped is 16 MiB; v7x physical 64) ----
    def _bytes(shape, dt):
        return int(np.prod(shape)) * jnp.dtype(dt).itemsize

    block_bytes = (
        _bytes((Bt, P, patch_size), jnp.float32) + _bytes((Bt, 1, F), jnp.float32)
        + _bytes((patch_size, E), jnp.bfloat16) + _bytes((F, E), jnp.bfloat16)
        + _bytes((7 + S, E), jnp.float32) + _bytes((E, C), jnp.float32)
        + _bytes((1, C), jnp.float32)
        + _bytes((E, 3 * E), jnp.bfloat16) + _bytes((E, E), jnp.bfloat16)
        + _bytes((E, M), jnp.bfloat16) + _bytes((M, E), jnp.bfloat16)
        + _bytes((8, Wmax), jnp.float32) + _bytes((Bt, 1, C), jnp.float32))
    vmem_need = 2 * block_bytes + _bytes((Bt * S, E), jnp.float32)   # double-buffered
    vmem_limit = int(min(max(2 * vmem_need, 32 << 20), 64 << 20))
    # TODO(synk): for very large E/M the per-layer weight working set exceeds
    # v7x's 64 MiB VMEM; tile W1/W2 along M with an extra inner grid axis then.

    # advisory cost estimate so XLA schedules surrounding ops around the call
    flops_layer = (2 * S * E * 3 * E            # fused QKV
                   + 4 * H * S * S * d          # scores + context
                   + 2 * S * E * E              # out projection
                   + 4 * S * E * M)             # MLP
    flops = B * L * flops_layer + B * (2 * P * patch_size * E + 2 * F * E) + 2 * B * E * C
    transcendentals = B * L * (H * S * S + S * M)
    bytes_weights = (B // Bt) * L * ((E * 3 * E + E * E + 2 * E * M) * 2 + 8 * Wmax * 4)
    bytes_io = B * (P * patch_size + F + C) * 4
    bytes_shared = (patch_size * E + F * E) * 2 + ((7 + S) * E + E * C + C) * 4
    cost = pl.CostEstimate(flops=int(flops), transcendentals=int(transcendentals),
                           bytes_accessed=int(bytes_weights + bytes_io + bytes_shared))

    logits = pl.pallas_call(
        kernel,
        grid=(B // Bt, L),
        in_specs=in_specs,
        out_specs=out_specs,
        out_shape=jax.ShapeDtypeStruct((B, 1, C), jnp.float32),
        scratch_shapes=[pltpu.VMEM((Bt * S, E), jnp.float32)],
        compiler_params=pltpu.CompilerParams(
            dimension_semantics=("parallel", "arbitrary"),
            vmem_limit_bytes=vmem_limit),
        cost_estimate=cost,
    )(patches, freq3d, proj_w_bf16, freq_w_bf16, embed,
      params["cls_w"], params["cls_b"].reshape(1, C),
      wqkv, wo, w1, w2, vec)
    return logits.reshape(B, C)


def _ref_encoder(x, p, num_heads):
    hp = jax.lax.Precision.HIGHEST
    e = x.shape[-1]
    d = e // num_heads
    xn = _layer_norm(x, p["ln1_g"], p["ln1_b"])
    q = jnp.matmul(xn, p["wq"], precision=hp) + p["bq"]
    k = jnp.matmul(xn, p["wk"], precision=hp) + p["bk"]
    v = jnp.matmul(xn, p["wv"], precision=hp) + p["bv"]
    scale = 1.0 / math.sqrt(d)
    heads = []
    for h in range(num_heads):
        qh = q[..., h * d:(h + 1) * d]
        kh = k[..., h * d:(h + 1) * d]
        vh = v[..., h * d:(h + 1) * d]
        s = jnp.matmul(qh, jnp.swapaxes(kh, -1, -2), precision=hp) * scale
        pr = jax.nn.softmax(s, axis=-1)
        heads.append(jnp.matmul(pr, vh, precision=hp))
    attn = jnp.concatenate(heads, axis=-1)
    attn = jnp.matmul(attn, p["wo"], precision=hp) + p["bo"]
    x1 = x + attn
    xn2 = _layer_norm(x1, p["ln2_g"], p["ln2_b"])
    hid = _gelu(jnp.matmul(xn2, p["w1"], precision=hp) + p["b1"])
    mlp = jnp.matmul(hid, p["w2"], precision=hp) + p["b2"]
    return x1 + mlp


def reference_forward(params, x, frequency, *, patch_size, num_patches,
                      embedding_dim, num_heads):
    hp = jax.lax.Precision.HIGHEST
    bsz = x.shape[0]
    e = embedding_dim
    patches = x.reshape(bsz, num_patches, patch_size)
    tok = jnp.matmul(patches, params["proj_w"], precision=hp) + params["proj_b"]
    tok = tok + params["time_token"]
    f = frequency.shape[1]
    fr = frequency.reshape(bsz, f // 2, 2)
    conv = jnp.sum(fr * params["conv_w"], axis=-1) + params["conv_b"]
    freq_emb = jnp.matmul(conv, params["freq_lin_w"], precision=hp) + params["freq_lin_b"]
    freq_tok = params["freq_token"] + freq_emb[:, None, :]
    cls = jnp.broadcast_to(params["class_token"], (bsz, 1, e))
    seq = jnp.concatenate([cls, tok, freq_tok], axis=1) + params["pos_embed"]
    for lp in params["layers"]:
        seq = _ref_encoder(seq, lp, num_heads)
    xn = _layer_norm(seq[:, 0, :], params["cls_ln_g"], params["cls_ln_b"])
    return jnp.matmul(xn, params["cls_w"], precision=hp) + params["cls_b"]


# ----------------------------------------------------------------------------
# main
# ----------------------------------------------------------------------------
if __name__ == "__main__":
    # small shapes consistent with the module's forward semantics
    # (E/3E/M picked as multiples of 128 so the packed lane dims are dense)
    B = 4
    len_of_gm = 32
    patch_size = 8
    num_patches = len_of_gm // patch_size        # 4
    embedding_dim = 128
    mlp_size = 256
    num_heads = 4
    num_layers = 2
    num_classes = 5
    freq_len = 16
    conv_out = freq_len // 2                     # 8 (analog of 1500 -> 750)
    batch_tile = 2                               # 2 batch elems per grid step
                                                 # -> batch grid extent 2 (v7x megacore)

    key = jax.random.PRNGKey(0)
    k_x, k_f, k_p = jax.random.split(key, 3)
    x = jax.random.normal(k_x, (B, len_of_gm, 1), jnp.float32)
    frequency = jax.random.normal(k_f, (B, freq_len), jnp.float32)

    params = init_params(
        k_p,
        patch_size=patch_size,
        num_patches=num_patches,
        embedding_dim=embedding_dim,
        mlp_size=mlp_size,
        num_layers=num_layers,
        num_classes=num_classes,
        conv_out=conv_out,
    )

    out = seismic_transformer_forward(
        params, x, frequency,
        patch_size=patch_size, num_patches=num_patches,
        embedding_dim=embedding_dim, mlp_size=mlp_size,
        num_heads=num_heads, num_layers=num_layers, num_classes=num_classes,
        batch_tile=batch_tile,
    )
    out = jax.block_until_ready(out)

    ref = reference_forward(
        params, x, frequency,
        patch_size=patch_size, num_patches=num_patches,
        embedding_dim=embedding_dim, num_heads=num_heads,
    )
    ref = jax.block_until_ready(ref)

    assert out.shape == (B, num_classes), out.shape
    np.testing.assert_allclose(np.asarray(out), np.asarray(ref),
                               atol=2e-2, rtol=2e-2)
    print("KERNEL_OK")
</pallas_src>

<mosaic_0001>
module attributes {stable_mosaic.version = 11 : i64} {
  func.func @_fused_forward_kernel(%arg0: i32, %arg1: i32, %arg2: memref<2x4x8xf32, #tpu.memory_space<vmem>>, %arg3: memref<2x1x16xf32, #tpu.memory_space<vmem>>, %arg4: memref<8x128xbf16, #tpu.memory_space<vmem>>, %arg5: memref<16x128xbf16, #tpu.memory_space<vmem>>, %arg6: memref<13x128xf32, #tpu.memory_space<vmem>>, %arg7: memref<128x5xf32, #tpu.memory_space<vmem>>, %arg8: memref<1x5xf32, #tpu.memory_space<vmem>>, %arg9: memref<1x128x384xbf16, #tpu.memory_space<vmem>>, %arg10: memref<1x128x128xbf16, #tpu.memory_space<vmem>>, %arg11: memref<1x128x256xbf16, #tpu.memory_space<vmem>>, %arg12: memref<1x256x128xbf16, #tpu.memory_space<vmem>>, %arg13: memref<1x8x384xf32, #tpu.memory_space<vmem>>, %arg14: memref<2x1x5xf32, #tpu.memory_space<vmem>>, %arg15: memref<12x128xf32, #tpu.memory_space<vmem>>) attributes {dimension_semantics = [#tpu.dimension_semantics<parallel>, #tpu.dimension_semantics<arbitrary>], iteration_bounds = array<i64: 2, 2>, scalar_prefetch = 0 : i64, scratch_operands = 1 : i64, tpu.core_type = #tpu.core_type<tc>, window_params = [{transform_indices = @transform_0, window_bounds = array<i64: 2, 4, 8>}, {transform_indices = @transform_1, window_bounds = array<i64: 2, 1, 16>}, {pipeline_mode = #tpu.pipeline_mode<synchronous>, transform_indices = @transform_2, window_bounds = array<i64: 8, 128>}, {pipeline_mode = #tpu.pipeline_mode<synchronous>, transform_indices = @transform_3, window_bounds = array<i64: 16, 128>}, {pipeline_mode = #tpu.pipeline_mode<synchronous>, transform_indices = @transform_4, window_bounds = array<i64: 13, 128>}, {pipeline_mode = #tpu.pipeline_mode<synchronous>, transform_indices = @transform_5, window_bounds = array<i64: 128, 5>}, {pipeline_mode = #tpu.pipeline_mode<synchronous>, transform_indices = @transform_6, window_bounds = array<i64: 1, 5>}, {transform_indices = @transform_7, window_bounds = array<i64: 1, 128, 384>}, {transform_indices = @transform_8, window_bounds = array<i64: 1, 128, 128>}, {transform_indices = @transform_9, window_bounds = array<i64: 1, 128, 256>}, {transform_indices = @transform_10, window_bounds = array<i64: 1, 256, 128>}, {transform_indices = @transform_11, window_bounds = array<i64: 1, 8, 384>}, {transform_indices = @transform_12, window_bounds = array<i64: 2, 1, 5>}]} {
    %c0_i32 = arith.constant 0 : i32
    %0 = arith.cmpi eq, %arg1, %c0_i32 : i32
    %1 = arith.extui %0 : i1 to i32
    %c0_i32_0 = arith.constant 0 : i32
    %2 = arith.cmpi ne, %1, %c0_i32_0 : i32
    scf.if %2 {
      %c0_68 = arith.constant 0 : index
      %c0_69 = arith.constant 0 : index
      %230 = vector.load %arg6[%c0_68, %c0_69] : memref<13x128xf32, #tpu.memory_space<vmem>>, vector<13x128xf32>
      %231 = vector.extract_strided_slice %230 {offsets = [7, 0], sizes = [6, 128], strides = [1, 1]} : vector<13x128xf32> to vector<6x128xf32>
      %c0_70 = arith.constant 0 : index
      %c0_71 = arith.constant 0 : index
      %c0_72 = arith.constant 0 : index
      %232 = vector.load %arg2[%c0_70, %c0_71, %c0_72] : memref<2x4x8xf32, #tpu.memory_space<vmem>>, vector<2x4x8xf32>
      %233 = vector.shape_cast %232 : vector<2x4x8xf32> to vector<8x8xf32>
      %234 = arith.truncf %233 : vector<8x8xf32> to vector<8x8xbf16>
      %c0_73 = arith.constant 0 : index
      %c0_74 = arith.constant 0 : index
      %235 = vector.load %arg4[%c0_73, %c0_74] : memref<8x128xbf16, #tpu.memory_space<vmem>>, vector<8x128xbf16>
      %cst_75 = arith.constant dense<0.000000e+00> : vector<8x128xf32>
      %236 = tpu.matmul %234, %235, %cst_75 {dimension_numbers = #tpu.dot_dimension_numbers<[1], [0], [0], [1], [0, 0, 1, 1], [], []>} : vector<8x8xbf16>, vector<8x128xbf16>, vector<8x128xf32> -> vector<8x128xf32>
      %237 = vector.extract_strided_slice %230 {offsets = [3, 0], sizes = [1, 128], strides = [1, 1]} : vector<13x128xf32> to vector<1x128xf32>
      %238 = vector.broadcast %237 : vector<1x128xf32> to vector<8x128xf32>
      %239 = arith.addf %236, %238 : vector<8x128xf32>
      %c0_76 = arith.constant 0 : index
      %c0_77 = arith.constant 0 : index
      %c0_78 = arith.constant 0 : index
      %240 = vector.load %arg3[%c0_76, %c0_77, %c0_78] : memref<2x1x16xf32, #tpu.memory_space<vmem>>, vector<2x1x16xf32>
      %241 = vector.shape_cast %240 : vector<2x1x16xf32> to vector<2x16xf32>
      %242 = arith.truncf %241 : vector<2x16xf32> to vector<2x16xbf16>
      %c0_79 = arith.constant 0 : index
      %c0_80 = arith.constant 0 : index
      %243 = vector.load %arg5[%c0_79, %c0_80] : memref<16x128xbf16, #tpu.memory_space<vmem>>, vector<16x128xbf16>
      %cst_81 = arith.constant dense<0.000000e+00> : vector<2x128xf32>
      %244 = tpu.matmul %242, %243, %cst_81 {dimension_numbers = #tpu.dot_dimension_numbers<[1], [0], [0], [1], [0, 0, 1, 1], [], []>} : vector<2x16xbf16>, vector<16x128xbf16>, vector<2x128xf32> -> vector<2x128xf32>
      %245 = vector.extract_strided_slice %230 {offsets = [4, 0], sizes = [1, 128], strides = [1, 1]} : vector<13x128xf32> to vector<1x128xf32>
      %246 = vector.broadcast %245 : vector<1x128xf32> to vector<2x128xf32>
      %247 = arith.addf %244, %246 : vector<2x128xf32>
      %248 = vector.extract_strided_slice %230 {offsets = [0, 0], sizes = [1, 128], strides = [1, 1]} : vector<13x128xf32> to vector<1x128xf32>
      %249 = vector.extract_strided_slice %231 {offsets = [0, 0], sizes = [1, 128], strides = [1, 1]} : vector<6x128xf32> to vector<1x128xf32>
      %250 = arith.addf %248, %249 : vector<1x128xf32>
      %c0_82 = arith.constant 0 : index
      %c0_83 = arith.constant 0 : index
      %251 = vector.load %arg15[%c0_82, %c0_83] : memref<12x128xf32, #tpu.memory_space<vmem>>, vector<1x128xf32>
      tpu.vector_store %arg15[%c0_82, %c0_83], %250 {strides = array<i32>} : memref<12x128xf32, #tpu.memory_space<vmem>>, vector<1x128xf32>,
      %252 = vector.extract_strided_slice %239 {offsets = [0, 0], sizes = [4, 128], strides = [1, 1]} : vector<8x128xf32> to vector<4x128xf32>
      %253 = vector.extract_strided_slice %230 {offsets = [1, 0], sizes = [1, 128], strides = [1, 1]} : vector<13x128xf32> to vector<1x128xf32>
      %254 = vector.broadcast %253 : vector<1x128xf32> to vector<4x128xf32>
      %255 = arith.addf %252, %254 : vector<4x128xf32>
      %256 = vector.extract_strided_slice %231 {offsets = [1, 0], sizes = [4, 128], strides = [1, 1]} : vector<6x128xf32> to vector<4x128xf32>
      %257 = arith.addf %255, %256 : vector<4x128xf32>
      %c1 = arith.constant 1 : index
      %c0_84 = arith.constant 0 : index
      %258 = vector.load %arg15[%c1, %c0_84] : memref<12x128xf32, #tpu.memory_space<vmem>>, vector<4x128xf32>
      tpu.vector_store %arg15[%c1, %c0_84], %257 {strides = array<i32>} : memref<12x128xf32, #tpu.memory_space<vmem>>, vector<4x128xf32>,
      %259 = vector.extract_strided_slice %247 {offsets = [0, 0], sizes = [1, 128], strides = [1, 1]} : vector<2x128xf32> to vector<1x128xf32>
      %260 = vector.extract_strided_slice %230 {offsets = [2, 0], sizes = [1, 128], strides = [1, 1]} : vector<13x128xf32> to vector<1x128xf32>
      %261 = arith.addf %259, %260 : vector<1x128xf32>
      %262 = vector.extract_strided_slice %231 {offsets = [5, 0], sizes = [1, 128], strides = [1, 1]} : vector<6x128xf32> to vector<1x128xf32>
      %263 = arith.addf %261, %262 : vector<1x128xf32>
      %c5 = arith.constant 5 : index
      %c0_85 = arith.constant 0 : index
      %264 = vector.load %arg15[%c5, %c0_85] : memref<12x128xf32, #tpu.memory_space<vmem>>, vector<1x128xf32>
      tpu.vector_store %arg15[%c5, %c0_85], %263 {strides = array<i32>} : memref<12x128xf32, #tpu.memory_space<vmem>>, vector<1x128xf32>,
      %265 = vector.extract_strided_slice %230 {offsets = [0, 0], sizes = [1, 128], strides = [1, 1]} : vector<13x128xf32> to vector<1x128xf32>
      %266 = vector.extract_strided_slice %231 {offsets = [0, 0], sizes = [1, 128], strides = [1, 1]} : vector<6x128xf32> to vector<1x128xf32>
      %267 = arith.addf %265, %266 : vector<1x128xf32>
      %c6 = arith.constant 6 : index
      %c0_86 = arith.constant 0 : index
      %268 = vector.load %arg15[%c6, %c0_86] : memref<12x128xf32, #tpu.memory_space<vmem>>, vector<1x128xf32>
      tpu.vector_store %arg15[%c6, %c0_86], %267 {strides = array<i32>} : memref<12x128xf32, #tpu.memory_space<vmem>>, vector<1x128xf32>,
      %269 = vector.extract_strided_slice %239 {offsets = [4, 0], sizes = [4, 128], strides = [1, 1]} : vector<8x128xf32> to vector<4x128xf32>
      %270 = vector.extract_strided_slice %230 {offsets = [1, 0], sizes = [1, 128], strides = [1, 1]} : vector<13x128xf32> to vector<1x128xf32>
      %271 = vector.broadcast %270 : vector<1x128xf32> to vector<4x128xf32>
      %272 = arith.addf %269, %271 : vector<4x128xf32>
      %273 = vector.extract_strided_slice %231 {offsets = [1, 0], sizes = [4, 128], strides = [1, 1]} : vector<6x128xf32> to vector<4x128xf32>
      %274 = arith.addf %272, %273 : vector<4x128xf32>
      %c7 = arith.constant 7 : index
      %c0_87 = arith.constant 0 : index
      %275 = vector.load %arg15[%c7, %c0_87] : memref<12x128xf32, #tpu.memory_space<vmem>>, vector<4x128xf32>
      tpu.vector_store %arg15[%c7, %c0_87], %274 {strides = array<i32>} : memref<12x128xf32, #tpu.memory_space<vmem>>, vector<4x128xf32>,
      %276 = vector.extract_strided_slice %247 {offsets = [1, 0], sizes = [1, 128], strides = [1, 1]} : vector<2x128xf32> to vector<1x128xf32>
      %277 = vector.extract_strided_slice %230 {offsets = [2, 0], sizes = [1, 128], strides = [1, 1]} : vector<13x128xf32> to vector<1x128xf32>
      %278 = arith.addf %276, %277 : vector<1x128xf32>
      %279 = vector.extract_strided_slice %231 {offsets = [5, 0], sizes = [1, 128], strides = [1, 1]} : vector<6x128xf32> to vector<1x128xf32>
      %280 = arith.addf %278, %279 : vector<1x128xf32>
      %c11 = arith.constant 11 : index
      %c0_88 = arith.constant 0 : index
      %281 = vector.load %arg15[%c11, %c0_88] : memref<12x128xf32, #tpu.memory_space<vmem>>, vector<1x128xf32>
      tpu.vector_store %arg15[%c11, %c0_88], %280 {strides = array<i32>} : memref<12x128xf32, #tpu.memory_space<vmem>>, vector<1x128xf32>,
    } else {
    }
    %c0 = arith.constant 0 : index
    %c0_1 = arith.constant 0 : index
    %c0_2 = arith.constant 0 : index
    %3 = vector.load %arg13[%c0, %c0_1, %c0_2] : memref<1x8x384xf32, #tpu.memory_space<vmem>>, vector<1x8x384xf32>
    %4 = vector.shape_cast %3 : vector<1x8x384xf32> to vector<8x384xf32>
    %5 = vector.extract_strided_slice %4 {offsets = [0, 0], sizes = [1, 128], strides = [1, 1]} : vector<8x384xf32> to vector<1x128xf32>
    %6 = vector.extract_strided_slice %4 {offsets = [1, 0], sizes = [1, 128], strides = [1, 1]} : vector<8x384xf32> to vector<1x128xf32>
    %7 = vector.extract_strided_slice %4 {offsets = [2, 0], sizes = [1, 128], strides = [1, 1]} : vector<8x384xf32> to vector<1x128xf32>
    %8 = vector.extract_strided_slice %4 {offsets = [3, 0], sizes = [1, 128], strides = [1, 1]} : vector<8x384xf32> to vector<1x128xf32>
    %9 = vector.extract_strided_slice %4 {offsets = [4, 0], sizes = [1, 128], strides = [1, 1]} : vector<8x384xf32> to vector<1x128xf32>
    %10 = vector.extract_strided_slice %4 {offsets = [5, 0], sizes = [1, 128], strides = [1, 1]} : vector<8x384xf32> to vector<1x128xf32>
    %11 = vector.extract_strided_slice %4 {offsets = [6, 0], sizes = [1, 384], strides = [1, 1]} : vector<8x384xf32> to vector<1x384xf32>
    %12 = vector.extract_strided_slice %4 {offsets = [7, 0], sizes = [1, 256], strides = [1, 1]} : vector<8x384xf32> to vector<1x256xf32>
    %c0_3 = arith.constant 0 : index
    %c0_4 = arith.constant 0 : index
    %13 = vector.load %arg15[%c0_3, %c0_4] : memref<12x128xf32, #tpu.memory_space<vmem>>, vector<12x128xf32>
    %cst = arith.constant dense<0.000000e+00> : vector<12xf32>
    %14 = vector.multi_reduction <add>, %13, %cst [1] : vector<12x128xf32> to vector<12xf32>
    %15 = vector.shape_cast %14 : vector<12xf32> to vector<12x1xf32>
    %cst_5 = arith.constant 1.280000e+02 : f32
    %16 = vector.broadcast %cst_5 : f32 to vector<12x1xf32>
    %17 = arith.divf %15, %16 : vector<12x1xf32>
    %18 = vector.broadcast %17 : vector<12x1xf32> to vector<12x128xf32>
    %19 = arith.subf %13, %18 : vector<12x128xf32>
    %20 = arith.mulf %19, %19 : vector<12x128xf32>
    %cst_6 = arith.constant dense<0.000000e+00> : vector<12xf32>
    %21 = vector.multi_reduction <add>, %20, %cst_6 [1] : vector<12x128xf32> to vector<12xf32>
    %22 = vector.shape_cast %21 : vector<12xf32> to vector<12x1xf32>
    %cst_7 = arith.constant 1.280000e+02 : f32
    %23 = vector.broadcast %cst_7 : f32 to vector<12x1xf32>
    %24 = arith.divf %22, %23 : vector<12x1xf32>
    %25 = vector.broadcast %17 : vector<12x1xf32> to vector<12x128xf32>
    %26 = arith.subf %13, %25 : vector<12x128xf32>
    %cst_8 = arith.constant 9.99999974E-6 : f32
    %27 = vector.broadcast %cst_8 : f32 to vector<12x1xf32>
    %28 = arith.addf %24, %27 : vector<12x1xf32>
    %29 = math.rsqrt %28 : vector<12x1xf32>
    %30 = vector.broadcast %29 : vector<12x1xf32> to vector<12x128xf32>
    %31 = arith.mulf %26, %30 : vector<12x128xf32>
    %32 = vector.broadcast %5 : vector<1x128xf32> to vector<12x128xf32>
    %33 = arith.mulf %31, %32 : vector<12x128xf32>
    %34 = vector.broadcast %6 : vector<1x128xf32> to vector<12x128xf32>
    %35 = arith.addf %33, %34 : vector<12x128xf32>
    %36 = arith.truncf %35 : vector<12x128xf32> to vector<12x128xbf16>
    %c0_9 = arith.constant 0 : index
    %c0_10 = arith.constant 0 : index
    %c0_11 = arith.constant 0 : index
    %37 = vector.load %arg9[%c0_9, %c0_10, %c0_11] : memref<1x128x384xbf16, #tpu.memory_space<vmem>>, vector<1x128x384xbf16>
    %38 = vector.shape_cast %37 : vector<1x128x384xbf16> to vector<128x384xbf16>
    %cst_12 = arith.constant dense<0.000000e+00> : vector<12x384xf32>
    %39 = tpu.matmul %36, %38, %cst_12 {dimension_numbers = #tpu.dot_dimension_numbers<[1], [0], [0], [1], [0, 0, 1, 1], [], []>} : vector<12x128xbf16>, vector<128x384xbf16>, vector<12x384xf32> -> vector<12x384xf32>
    %40 = vector.broadcast %11 : vector<1x384xf32> to vector<12x384xf32>
    %41 = arith.addf %39, %40 : vector<12x384xf32>
    %42 = vector.extract_strided_slice %41 {offsets = [0, 0], sizes = [12, 128], strides = [1, 1]} : vector<12x384xf32> to vector<12x128xf32>
    %43 = vector.extract_strided_slice %41 {offsets = [0, 128], sizes = [12, 128], strides = [1, 1]} : vector<12x384xf32> to vector<12x128xf32>
    %44 = vector.extract_strided_slice %41 {offsets = [0, 256], sizes = [12, 128], strides = [1, 1]} : vector<12x384xf32> to vector<12x128xf32>
    %45 = vector.extract_strided_slice %42 {offsets = [0, 0], sizes = [6, 32], strides = [1, 1]} : vector<12x128xf32> to vector<6x32xf32>
    %46 = vector.extract_strided_slice %43 {offsets = [0, 0], sizes = [6, 32], strides = [1, 1]} : vector<12x128xf32> to vector<6x32xf32>
    %47 = tpu.transpose %46, [1, 0] : vector<6x32xf32> -> vector<32x6xf32>
    %cst_13 = arith.constant dense<0.000000e+00> : vector<6x6xf32>
    %48 = tpu.matmul %45, %47, %cst_13 {dimension_numbers = #tpu.dot_dimension_numbers<[1], [0], [0], [1], [0, 0, 1, 1], [], []>} : vector<6x32xf32>, vector<32x6xf32>, vector<6x6xf32> -> vector<6x6xf32>
    %cst_14 = arith.constant dense<0xFF800000> : vector<6xf32>
    %49 = vector.multi_reduction <maximumf>, %48, %cst_14 [1] : vector<6x6xf32> to vector<6xf32>
    %50 = vector.shape_cast %49 : vector<6xf32> to vector<6x1xf32>
    %51 = vector.broadcast %50 : vector<6x1xf32> to vector<6x6xf32>
    %52 = arith.subf %48, %51 : vector<6x6xf32>
    %53 = math.exp %52 : vector<6x6xf32>
    %cst_15 = arith.constant dense<0.000000e+00> : vector<6xf32>
    %54 = vector.multi_reduction <add>, %53, %cst_15 [1] : vector<6x6xf32> to vector<6xf32>
    %55 = vector.shape_cast %54 : vector<6xf32> to vector<6x1xf32>
    %56 = tpu.reciprocal %55 {approx = true} : vector<6x1xf32> -> vector<6x1xf32>
    %57 = vector.broadcast %56 : vector<6x1xf32> to vector<6x6xf32>
    %58 = arith.mulf %53, %57 : vector<6x6xf32>
    %59 = vector.extract_strided_slice %44 {offsets = [0, 0], sizes = [6, 32], strides = [1, 1]} : vector<12x128xf32> to vector<6x32xf32>
    %cst_16 = arith.constant dense<0.000000e+00> : vector<6x32xf32>
    %60 = tpu.matmul %58, %59, %cst_16 {dimension_numbers = #tpu.dot_dimension_numbers<[1], [0], [0], [1], [0, 0, 1, 1], [], []>} : vector<6x6xf32>, vector<6x32xf32>, vector<6x32xf32> -> vector<6x32xf32>
    %61 = vector.extract_strided_slice %42 {offsets = [0, 32], sizes = [6, 32], strides = [1, 1]} : vector<12x128xf32> to vector<6x32xf32>
    %62 = vector.extract_strided_slice %43 {offsets = [0, 32], sizes = [6, 32], strides = [1, 1]} : vector<12x128xf32> to vector<6x32xf32>
    %63 = tpu.transpose %62, [1, 0] : vector<6x32xf32> -> vector<32x6xf32>
    %cst_17 = arith.constant dense<0.000000e+00> : vector<6x6xf32>
    %64 = tpu.matmul %61, %63, %cst_17 {dimension_numbers = #tpu.dot_dimension_numbers<[1], [0], [0], [1], [0, 0, 1, 1], [], []>} : vector<6x32xf32>, vector<32x6xf32>, vector<6x6xf32> -> vector<6x6xf32>
    %cst_18 = arith.constant dense<0xFF800000> : vector<6xf32>
    %65 = vector.multi_reduction <maximumf>, %64, %cst_18 [1] : vector<6x6xf32> to vector<6xf32>
    %66 = vector.shape_cast %65 : vector<6xf32> to vector<6x1xf32>
    %67 = vector.broadcast %66 : vector<6x1xf32> to vector<6x6xf32>
    %68 = arith.subf %64, %67 : vector<6x6xf32>
    %69 = math.exp %68 : vector<6x6xf32>
    %cst_19 = arith.constant dense<0.000000e+00> : vector<6xf32>
    %70 = vector.multi_reduction <add>, %69, %cst_19 [1] : vector<6x6xf32> to vector<6xf32>
    %71 = vector.shape_cast %70 : vector<6xf32> to vector<6x1xf32>
    %72 = tpu.reciprocal %71 {approx = true} : vector<6x1xf32> -> vector<6x1xf32>
    %73 = vector.broadcast %72 : vector<6x1xf32> to vector<6x6xf32>
    %74 = arith.mulf %69, %73 : vector<6x6xf32>
    %75 = vector.extract_strided_slice %44 {offsets = [0, 32], sizes = [6, 32], strides = [1, 1]} : vector<12x128xf32> to vector<6x32xf32>
    %cst_20 = arith.constant dense<0.000000e+00> : vector<6x32xf32>
    %76 = tpu.matmul %74, %75, %cst_20 {dimension_numbers = #tpu.dot_dimension_numbers<[1], [0], [0], [1], [0, 0, 1, 1], [], []>} : vector<6x6xf32>, vector<6x32xf32>, vector<6x32xf32> -> vector<6x32xf32>
    %77 = vector.extract_strided_slice %42 {offsets = [0, 64], sizes = [6, 32], strides = [1, 1]} : vector<12x128xf32> to vector<6x32xf32>
    %78 = vector.extract_strided_slice %43 {offsets = [0, 64], sizes = [6, 32], strides = [1, 1]} : vector<12x128xf32> to vector<6x32xf32>
    %79 = tpu.transpose %78, [1, 0] : vector<6x32xf32> -> vector<32x6xf32>
    %cst_21 = arith.constant dense<0.000000e+00> : vector<6x6xf32>
    %80 = tpu.matmul %77, %79, %cst_21 {dimension_numbers = #tpu.dot_dimension_numbers<[1], [0], [0], [1], [0, 0, 1, 1], [], []>} : vector<6x32xf32>, vector<32x6xf32>, vector<6x6xf32> -> vector<6x6xf32>
    %cst_22 = arith.constant dense<0xFF800000> : vector<6xf32>
    %81 = vector.multi_reduction <maximumf>, %80, %cst_22 [1] : vector<6x6xf32> to vector<6xf32>
    %82 = vector.shape_cast %81 : vector<6xf32> to vector<6x1xf32>
    %83 = vector.broadcast %82 : vector<6x1xf32> to vector<6x6xf32>
    %84 = arith.subf %80, %83 : vector<6x6xf32>
    %85 = math.exp %84 : vector<6x6xf32>
    %cst_23 = arith.constant dense<0.000000e+00> : vector<6xf32>
    %86 = vector.multi_reduction <add>, %85, %cst_23 [1] : vector<6x6xf32> to vector<6xf32>
    %87 = vector.shape_cast %86 : vector<6xf32> to vector<6x1xf32>
    %88 = tpu.reciprocal %87 {approx = true} : vector<6x1xf32> -> vector<6x1xf32>
    %89 = vector.broadcast %88 : vector<6x1xf32> to vector<6x6xf32>
    %90 = arith.mulf %85, %89 : vector<6x6xf32>
    %91 = vector.extract_strided_slice %44 {offsets = [0, 64], sizes = [6, 32], strides = [1, 1]} : vector<12x128xf32> to vector<6x32xf32>
    %cst_24 = arith.constant dense<0.000000e+00> : vector<6x32xf32>
    %92 = tpu.matmul %90, %91, %cst_24 {dimension_numbers = #tpu.dot_dimension_numbers<[1], [0], [0], [1], [0, 0, 1, 1], [], []>} : vector<6x6xf32>, vector<6x32xf32>, vector<6x32xf32> -> vector<6x32xf32>
    %93 = vector.extract_strided_slice %42 {offsets = [0, 96], sizes = [6, 32], strides = [1, 1]} : vector<12x128xf32> to vector<6x32xf32>
    %94 = vector.extract_strided_slice %43 {offsets = [0, 96], sizes = [6, 32], strides = [1, 1]} : vector<12x128xf32> to vector<6x32xf32>
    %95 = tpu.transpose %94, [1, 0] : vector<6x32xf32> -> vector<32x6xf32>
    %cst_25 = arith.constant dense<0.000000e+00> : vector<6x6xf32>
    %96 = tpu.matmul %93, %95, %cst_25 {dimension_numbers = #tpu.dot_dimension_numbers<[1], [0], [0], [1], [0, 0, 1, 1], [], []>} : vector<6x32xf32>, vector<32x6xf32>, vector<6x6xf32> -> vector<6x6xf32>
    %cst_26 = arith.constant dense<0xFF800000> : vector<6xf32>
    %97 = vector.multi_reduction <maximumf>, %96, %cst_26 [1] : vector<6x6xf32> to vector<6xf32>
    %98 = vector.shape_cast %97 : vector<6xf32> to vector<6x1xf32>
    %99 = vector.broadcast %98 : vector<6x1xf32> to vector<6x6xf32>
    %100 = arith.subf %96, %99 : vector<6x6xf32>
    %101 = math.exp %100 : vector<6x6xf32>
    %cst_27 = arith.constant dense<0.000000e+00> : vector<6xf32>
    %102 = vector.multi_reduction <add>, %101, %cst_27 [1] : vector<6x6xf32> to vector<6xf32>
    %103 = vector.shape_cast %102 : vector<6xf32> to vector<6x1xf32>
    %104 = tpu.reciprocal %103 {approx = true} : vector<6x1xf32> -> vector<6x1xf32>
    %105 = vector.broadcast %104 : vector<6x1xf32> to vector<6x6xf32>
    %106 = arith.mulf %101, %105 : vector<6x6xf32>
    %107 = vector.extract_strided_slice %44 {offsets = [0, 96], sizes = [6, 32], strides = [1, 1]} : vector<12x128xf32> to vector<6x32xf32>
    %cst_28 = arith.constant dense<0.000000e+00> : vector<6x32xf32>
    %108 = tpu.matmul %106, %107, %cst_28 {dimension_numbers = #tpu.dot_dimension_numbers<[1], [0], [0], [1], [0, 0, 1, 1], [], []>} : vector<6x6xf32>, vector<6x32xf32>, vector<6x32xf32> -> vector<6x32xf32>
    %109 = tpu.concatenate %60, %76, %92, %108 in 1 : vector<6x32xf32>, vector<6x32xf32>, vector<6x32xf32>, vector<6x32xf32> -> vector<6x128xf32>
    %110 = vector.extract_strided_slice %42 {offsets = [6, 0], sizes = [6, 32], strides = [1, 1]} : vector<12x128xf32> to vector<6x32xf32>
    %111 = vector.extract_strided_slice %43 {offsets = [6, 0], sizes = [6, 32], strides = [1, 1]} : vector<12x128xf32> to vector<6x32xf32>
    %112 = tpu.transpose %111, [1, 0] : vector<6x32xf32> -> vector<32x6xf32>
    %cst_29 = arith.constant dense<0.000000e+00> : vector<6x6xf32>
    %113 = tpu.matmul %110, %112, %cst_29 {dimension_numbers = #tpu.dot_dimension_numbers<[1], [0], [0], [1], [0, 0, 1, 1], [], []>} : vector<6x32xf32>, vector<32x6xf32>, vector<6x6xf32> -> vector<6x6xf32>
    %cst_30 = arith.constant dense<0xFF800000> : vector<6xf32>
    %114 = vector.multi_reduction <maximumf>, %113, %cst_30 [1] : vector<6x6xf32> to vector<6xf32>
    %115 = vector.shape_cast %114 : vector<6xf32> to vector<6x1xf32>
    %116 = vector.broadcast %115 : vector<6x1xf32> to vector<6x6xf32>
    %117 = arith.subf %113, %116 : vector<6x6xf32>
    %118 = math.exp %117 : vector<6x6xf32>
    %cst_31 = arith.constant dense<0.000000e+00> : vector<6xf32>
    %119 = vector.multi_reduction <add>, %118, %cst_31 [1] : vector<6x6xf32> to vector<6xf32>
    %120 = vector.shape_cast %119 : vector<6xf32> to vector<6x1xf32>
    %121 = tpu.reciprocal %120 {approx = true} : vector<6x1xf32> -> vector<6x1xf32>
    %122 = vector.broadcast %121 : vector<6x1xf32> to vector<6x6xf32>
    %123 = arith.mulf %118, %122 : vector<6x6xf32>
    %124 = vector.extract_strided_slice %44 {offsets = [6, 0], sizes = [6, 32], strides = [1, 1]} : vector<12x128xf32> to vector<6x32xf32>
    %cst_32 = arith.constant dense<0.000000e+00> : vector<6x32xf32>
    %125 = tpu.matmul %123, %124, %cst_32 {dimension_numbers = #tpu.dot_dimension_numbers<[1], [0], [0], [1], [0, 0, 1, 1], [], []>} : vector<6x6xf32>, vector<6x32xf32>, vector<6x32xf32> -> vector<6x32xf32>
    %126 = vector.extract_strided_slice %42 {offsets = [6, 32], sizes = [6, 32], strides = [1, 1]} : vector<12x128xf32> to vector<6x32xf32>
    %127 = vector.extract_strided_slice %43 {offsets = [6, 32], sizes = [6, 32], strides = [1, 1]} : vector<12x128xf32> to vector<6x32xf32>
    %128 = tpu.transpose %127, [1, 0] : vector<6x32xf32> -> vector<32x6xf32>
    %cst_33 = arith.constant dense<0.000000e+00> : vector<6x6xf32>
    %129 = tpu.matmul %126, %128, %cst_33 {dimension_numbers = #tpu.dot_dimension_numbers<[1], [0], [0], [1], [0, 0, 1, 1], [], []>} : vector<6x32xf32>, vector<32x6xf32>, vector<6x6xf32> -> vector<6x6xf32>
    %cst_34 = arith.constant dense<0xFF800000> : vector<6xf32>
    %130 = vector.multi_reduction <maximumf>, %129, %cst_34 [1] : vector<6x6xf32> to vector<6xf32>
    %131 = vector.shape_cast %130 : vector<6xf32> to vector<6x1xf32>
    %132 = vector.broadcast %131 : vector<6x1xf32> to vector<6x6xf32>
    %133 = arith.subf %129, %132 : vector<6x6xf32>
    %134 = math.exp %133 : vector<6x6xf32>
    %cst_35 = arith.constant dense<0.000000e+00> : vector<6xf32>
    %135 = vector.multi_reduction <add>, %134, %cst_35 [1] : vector<6x6xf32> to vector<6xf32>
    %136 = vector.shape_cast %135 : vector<6xf32> to vector<6x1xf32>
    %137 = tpu.reciprocal %136 {approx = true} : vector<6x1xf32> -> vector<6x1xf32>
    %138 = vector.broadcast %137 : vector<6x1xf32> to vector<6x6xf32>
    %139 = arith.mulf %134, %138 : vector<6x6xf32>
    %140 = vector.extract_strided_slice %44 {offsets = [6, 32], sizes = [6, 32], strides = [1, 1]} : vector<12x128xf32> to vector<6x32xf32>
    %cst_36 = arith.constant dense<0.000000e+00> : vector<6x32xf32>
    %141 = tpu.matmul %139, %140, %cst_36 {dimension_numbers = #tpu.dot_dimension_numbers<[1], [0], [0], [1], [0, 0, 1, 1], [], []>} : vector<6x6xf32>, vector<6x32xf32>, vector<6x32xf32> -> vector<6x32xf32>
    %142 = vector.extract_strided_slice %42 {offsets = [6, 64], sizes = [6, 32], strides = [1, 1]} : vector<12x128xf32> to vector<6x32xf32>
    %143 = vector.extract_strided_slice %43 {offsets = [6, 64], sizes = [6, 32], strides = [1, 1]} : vector<12x128xf32> to vector<6x32xf32>
    %144 = tpu.transpose %143, [1, 0] : vector<6x32xf32> -> vector<32x6xf32>
    %cst_37 = arith.constant dense<0.000000e+00> : vector<6x6xf32>
    %145 = tpu.matmul %142, %144, %cst_37 {dimension_numbers = #tpu.dot_dimension_numbers<[1], [0], [0], [1], [0, 0, 1, 1], [], []>} : vector<6x32xf32>, vector<32x6xf32>, vector<6x6xf32> -> vector<6x6xf32>
    %cst_38 = arith.constant dense<0xFF800000> : vector<6xf32>
    %146 = vector.multi_reduction <maximumf>, %145, %cst_38 [1] : vector<6x6xf32> to vector<6xf32>
    %147 = vector.shape_cast %146 : vector<6xf32> to vector<6x1xf32>
    %148 = vector.broadcast %147 : vector<6x1xf32> to vector<6x6xf32>
    %149 = arith.subf %145, %148 : vector<6x6xf32>
    %150 = math.exp %149 : vector<6x6xf32>
    %cst_39 = arith.constant dense<0.000000e+00> : vector<6xf32>
    %151 = vector.multi_reduction <add>, %150, %cst_39 [1] : vector<6x6xf32> to vector<6xf32>
    %152 = vector.shape_cast %151 : vector<6xf32> to vector<6x1xf32>
    %153 = tpu.reciprocal %152 {approx = true} : vector<6x1xf32> -> vector<6x1xf32>
    %154 = vector.broadcast %153 : vector<6x1xf32> to vector<6x6xf32>
    %155 = arith.mulf %150, %154 : vector<6x6xf32>
    %156 = vector.extract_strided_slice %44 {offsets = [6, 64], sizes = [6, 32], strides = [1, 1]} : vector<12x128xf32> to vector<6x32xf32>
    %cst_40 = arith.constant dense<0.000000e+00> : vector<6x32xf32>
    %157 = tpu.matmul %155, %156, %cst_40 {dimension_numbers = #tpu.dot_dimension_numbers<[1], [0], [0], [1], [0, 0, 1, 1], [], []>} : vector<6x6xf32>, vector<6x32xf32>, vector<6x32xf32> -> vector<6x32xf32>
    %158 = vector.extract_strided_slice %42 {offsets = [6, 96], sizes = [6, 32], strides = [1, 1]} : vector<12x128xf32> to vector<6x32xf32>
    %159 = vector.extract_strided_slice %43 {offsets = [6, 96], sizes = [6, 32], strides = [1, 1]} : vector<12x128xf32> to vector<6x32xf32>
    %160 = tpu.transpose %159, [1, 0] : vector<6x32xf32> -> vector<32x6xf32>
    %cst_41 = arith.constant dense<0.000000e+00> : vector<6x6xf32>
    %161 = tpu.matmul %158, %160, %cst_41 {dimension_numbers = #tpu.dot_dimension_numbers<[1], [0], [0], [1], [0, 0, 1, 1], [], []>} : vector<6x32xf32>, vector<32x6xf32>, vector<6x6xf32> -> vector<6x6xf32>
    %cst_42 = arith.constant dense<0xFF800000> : vector<6xf32>
    %162 = vector.multi_reduction <maximumf>, %161, %cst_42 [1] : vector<6x6xf32> to vector<6xf32>
    %163 = vector.shape_cast %162 : vector<6xf32> to vector<6x1xf32>
    %164 = vector.broadcast %163 : vector<6x1xf32> to vector<6x6xf32>
    %165 = arith.subf %161, %164 : vector<6x6xf32>
    %166 = math.exp %165 : vector<6x6xf32>
    %cst_43 = arith.constant dense<0.000000e+00> : vector<6xf32>
    %167 = vector.multi_reduction <add>, %166, %cst_43 [1] : vector<6x6xf32> to vector<6xf32>
    %168 = vector.shape_cast %167 : vector<6xf32> to vector<6x1xf32>
    %169 = tpu.reciprocal %168 {approx = true} : vector<6x1xf32> -> vector<6x1xf32>
    %170 = vector.broadcast %169 : vector<6x1xf32> to vector<6x6xf32>
    %171 = arith.mulf %166, %170 : vector<6x6xf32>
    %172 = vector.extract_strided_slice %44 {offsets = [6, 96], sizes = [6, 32], strides = [1, 1]} : vector<12x128xf32> to vector<6x32xf32>
    %cst_44 = arith.constant dense<0.000000e+00> : vector<6x32xf32>
    %173 = tpu.matmul %171, %172, %cst_44 {dimension_numbers = #tpu.dot_dimension_numbers<[1], [0], [0], [1], [0, 0, 1, 1], [], []>} : vector<6x6xf32>, vector<6x32xf32>, vector<6x32xf32> -> vector<6x32xf32>
    %174 = tpu.concatenate %125, %141, %157, %173 in 1 : vector<6x32xf32>, vector<6x32xf32>, vector<6x32xf32>, vector<6x32xf32> -> vector<6x128xf32>
    %175 = tpu.concatenate %109, %174 in 0 : vector<6x128xf32>, vector<6x128xf32> -> vector<12x128xf32>
    %176 = arith.truncf %175 : vector<12x128xf32> to vector<12x128xbf16>
    %c0_45 = arith.constant 0 : index
    %c0_46 = arith.constant 0 : index
    %c0_47 = arith.constant 0 : index
    %177 = vector.load %arg10[%c0_45, %c0_46, %c0_47] : memref<1x128x128xbf16, #tpu.memory_space<vmem>>, vector<1x128x128xbf16>
    %178 = vector.shape_cast %177 : vector<1x128x128xbf16> to vector<128x128xbf16>
    %cst_48 = arith.constant dense<0.000000e+00> : vector<12x128xf32>
    %179 = tpu.matmul %176, %178, %cst_48 {dimension_numbers = #tpu.dot_dimension_numbers<[1], [0], [0], [1], [0, 0, 1, 1], [], []>} : vector<12x128xbf16>, vector<128x128xbf16>, vector<12x128xf32> -> vector<12x128xf32>
    %180 = arith.addf %13, %179 : vector<12x128xf32>
    %181 = vector.broadcast %9 : vector<1x128xf32> to vector<12x128xf32>
    %182 = arith.addf %180, %181 : vector<12x128xf32>
    %cst_49 = arith.constant dense<0.000000e+00> : vector<12xf32>
    %183 = vector.multi_reduction <add>, %182, %cst_49 [1] : vector<12x128xf32> to vector<12xf32>
    %184 = vector.shape_cast %183 : vector<12xf32> to vector<12x1xf32>
    %cst_50 = arith.constant 1.280000e+02 : f32
    %185 = vector.broadcast %cst_50 : f32 to vector<12x1xf32>
    %186 = arith.divf %184, %185 : vector<12x1xf32>
    %187 = vector.broadcast %186 : vector<12x1xf32> to vector<12x128xf32>
    %188 = arith.subf %182, %187 : vector<12x128xf32>
    %189 = arith.mulf %188, %188 : vector<12x128xf32>
    %cst_51 = arith.constant dense<0.000000e+00> : vector<12xf32>
    %190 = vector.multi_reduction <add>, %189, %cst_51 [1] : vector<12x128xf32> to vector<12xf32>
    %191 = vector.shape_cast %190 : vector<12xf32> to vector<12x1xf32>
    %cst_52 = arith.constant 1.280000e+02 : f32
    %192 = vector.broadcast %cst_52 : f32 to vector<12x1xf32>
    %193 = arith.divf %191, %192 : vector<12x1xf32>
    %194 = vector.broadcast %186 : vector<12x1xf32> to vector<12x128xf32>
    %195 = arith.subf %182, %194 : vector<12x128xf32>
    %cst_53 = arith.constant 9.99999974E-6 : f32
    %196 = vector.broadcast %cst_53 : f32 to vector<12x1xf32>
    %197 = arith.addf %193, %196 : vector<12x1xf32>
    %198 = math.rsqrt %197 : vector<12x1xf32>
    %199 = vector.broadcast %198 : vector<12x1xf32> to vector<12x128xf32>
    %200 = arith.mulf %195, %199 : vector<12x128xf32>
    %201 = vector.broadcast %7 : vector<1x128xf32> to vector<12x128xf32>
    %202 = arith.mulf %200, %201 : vector<12x128xf32>
    %203 = vector.broadcast %8 : vector<1x128xf32> to vector<12x128xf32>
    %204 = arith.addf %202, %203 : vector<12x128xf32>
    %205 = arith.truncf %204 : vector<12x128xf32> to vector<12x128xbf16>
    %c0_54 = arith.constant 0 : index
    %c0_55 = arith.constant 0 : index
    %c0_56 = arith.constant 0 : index
    %206 = vector.load %arg11[%c0_54, %c0_55, %c0_56] : memref<1x128x256xbf16, #tpu.memory_space<vmem>>, vector<1x128x256xbf16>
    %207 = vector.shape_cast %206 : vector<1x128x256xbf16> to vector<128x256xbf16>
    %cst_57 = arith.constant dense<0.000000e+00> : vector<12x256xf32>
    %208 = tpu.matmul %205, %207, %cst_57 {dimension_numbers = #tpu.dot_dimension_numbers<[1], [0], [0], [1], [0, 0, 1, 1], [], []>} : vector<12x128xbf16>, vector<128x256xbf16>, vector<12x256xf32> -> vector<12x256xf32>
    %209 = vector.broadcast %12 : vector<1x256xf32> to vector<12x256xf32>
    %210 = arith.addf %208, %209 : vector<12x256xf32>
    %cst_58 = arith.constant 5.000000e-01 : f32
    %211 = vector.broadcast %cst_58 : f32 to vector<12x256xf32>
    %212 = arith.mulf %211, %210 : vector<12x256xf32>
    %cst_59 = arith.constant 0.707106769 : f32
    %213 = vector.broadcast %cst_59 : f32 to vector<12x256xf32>
    %214 = arith.mulf %210, %213 : vector<12x256xf32>
    %215 = math.erf %214 : vector<12x256xf32>
    %cst_60 = arith.constant 1.000000e+00 : f32
    %216 = vector.broadcast %cst_60 : f32 to vector<12x256xf32>
    %217 = arith.addf %216, %215 : vector<12x256xf32>
    %218 = arith.mulf %212, %217 : vector<12x256xf32>
    %219 = arith.truncf %218 : vector<12x256xf32> to vector<12x256xbf16>
    %c0_61 = arith.constant 0 : index
    %c0_62 = arith.constant 0 : index
    %c0_63 = arith.constant 0 : index
    %220 = vector.load %arg12[%c0_61, %c0_62, %c0_63] : memref<1x256x128xbf16, #tpu.memory_space<vmem>>, vector<1x256x128xbf16>
    %221 = vector.shape_cast %220 : vector<1x256x128xbf16> to vector<256x128xbf16>
    %cst_64 = arith.constant dense<0.000000e+00> : vector<12x128xf32>
    %222 = tpu.matmul %219, %221, %cst_64 {dimension_numbers = #tpu.dot_dimension_numbers<[1], [0], [0], [1], [0, 0, 1, 1], [], []>} : vector<12x256xbf16>, vector<256x128xbf16>, vector<12x128xf32> -> vector<12x128xf32>
    %223 = vector.broadcast %10 : vector<1x128xf32> to vector<12x128xf32>
    %224 = arith.addf %222, %223 : vector<12x128xf32>
    %225 = arith.addf %182, %224 : vector<12x128xf32>
    %c0_65 = arith.constant 0 : index
    %c0_66 = arith.constant 0 : index
    %226 = vector.load %arg15[%c0_65, %c0_66] : memref<12x128xf32, #tpu.memory_space<vmem>>, vector<12x128xf32>
    tpu.vector_store %arg15[%c0_65, %c0_66], %225 {strides = array<i32>} : memref<12x128xf32, #tpu.memory_space<vmem>>, vector<12x128xf32>,
    %c1_i32 = arith.constant 1 : i32
    %227 = arith.cmpi eq, %arg1, %c1_i32 : i32
    %228 = arith.extui %227 : i1 to i32
    %c0_i32_67 = arith.constant 0 : i32
    %229 = arith.cmpi ne, %228, %c0_i32_67 : i32
    scf.if %229 {
      %c0_68 = arith.constant 0 : index
      %c0_69 = arith.constant 0 : index
      %230 = vector.load %arg6[%c0_68, %c0_69] : memref<13x128xf32, #tpu.memory_space<vmem>>, vector<13x128xf32>
      %231 = vector.extract_strided_slice %225 {offsets = [0, 0], sizes = [1, 128], strides = [1, 1]} : vector<12x128xf32> to vector<1x128xf32>
      %232 = vector.extract_strided_slice %225 {offsets = [6, 0], sizes = [1, 128], strides = [1, 1]} : vector<12x128xf32> to vector<1x128xf32>
      %233 = tpu.concatenate %231, %232 in 0 : vector<1x128xf32>, vector<1x128xf32> -> vector<2x128xf32>
      %234 = vector.extract_strided_slice %230 {offsets = [5, 0], sizes = [1, 128], strides = [1, 1]} : vector<13x128xf32> to vector<1x128xf32>
      %235 = vector.extract_strided_slice %230 {offsets = [6, 0], sizes = [1, 128], strides = [1, 1]} : vector<13x128xf32> to vector<1x128xf32>
      %cst_70 = arith.constant dense<0.000000e+00> : vector<2xf32>
      %236 = vector.multi_reduction <add>, %233, %cst_70 [1] : vector<2x128xf32> to vector<2xf32>
      %237 = vector.shape_cast %236 : vector<2xf32> to vector<2x1xf32>
      %cst_71 = arith.constant 1.280000e+02 : f32
      %238 = vector.broadcast %cst_71 : f32 to vector<2x1xf32>
      %239 = arith.divf %237, %238 : vector<2x1xf32>
      %240 = vector.broadcast %239 : vector<2x1xf32> to vector<2x128xf32>
      %241 = arith.subf %233, %240 : vector<2x128xf32>
      %242 = arith.mulf %241, %241 : vector<2x128xf32>
      %cst_72 = arith.constant dense<0.000000e+00> : vector<2xf32>
      %243 = vector.multi_reduction <add>, %242, %cst_72 [1] : vector<2x128xf32> to vector<2xf32>
      %244 = vector.shape_cast %243 : vector<2xf32> to vector<2x1xf32>
      %cst_73 = arith.constant 1.280000e+02 : f32
      %245 = vector.broadcast %cst_73 : f32 to vector<2x1xf32>
      %246 = arith.divf %244, %245 : vector<2x1xf32>
      %247 = vector.broadcast %239 : vector<2x1xf32> to vector<2x128xf32>
      %248 = arith.subf %233, %247 : vector<2x128xf32>
      %cst_74 = arith.constant 9.99999974E-6 : f32
      %249 = vector.broadcast %cst_74 : f32 to vector<2x1xf32>
      %250 = arith.addf %246, %249 : vector<2x1xf32>
      %251 = math.rsqrt %250 : vector<2x1xf32>
      %252 = vector.broadcast %251 : vector<2x1xf32> to vector<2x128xf32>
      %253 = arith.mulf %248, %252 : vector<2x128xf32>
      %254 = vector.broadcast %234 : vector<1x128xf32> to vector<2x128xf32>
      %255 = arith.mulf %253, %254 : vector<2x128xf32>
      %256 = vector.broadcast %235 : vector<1x128xf32> to vector<2x128xf32>
      %257 = arith.addf %255, %256 : vector<2x128xf32>
      %c0_75 = arith.constant 0 : index
      %c0_76 = arith.constant 0 : index
      %258 = vector.load %arg7[%c0_75, %c0_76] : memref<128x5xf32, #tpu.memory_space<vmem>>, vector<128x5xf32>
      %cst_77 = arith.constant dense<0.000000e+00> : vector<2x5xf32>
      %259 = tpu.matmul %257, %258, %cst_77 {dimension_numbers = #tpu.dot_dimension_numbers<[1], [0], [0], [1], [0, 0, 1, 1], [], []>} : vector<2x128xf32>, vector<128x5xf32>, vector<2x5xf32> -> vector<2x5xf32>
      %c0_78 = arith.constant 0 : index
      %c0_79 = arith.constant 0 : index
      %260 = vector.load %arg8[%c0_78, %c0_79] : memref<1x5xf32, #tpu.memory_space<vmem>>, vector<1x5xf32>
      %261 = vector.broadcast %260 : vector<1x5xf32> to vector<2x5xf32>
      %262 = arith.addf %259, %261 : vector<2x5xf32>
      %263 = vector.shape_cast %262 : vector<2x5xf32> to vector<2x1x5xf32>
      %c0_80 = arith.constant 0 : index
      %c0_81 = arith.constant 0 : index
      %c0_82 = arith.constant 0 : index
      %264 = vector.load %arg14[%c0_80, %c0_81, %c0_82] : memref<2x1x5xf32, #tpu.memory_space<vmem>>, vector<2x1x5xf32>
      tpu.vector_store %arg14[%c0_80, %c0_81, %c0_82], %263 {strides = array<i32>} : memref<2x1x5xf32, #tpu.memory_space<vmem>>, vector<2x1x5xf32>,
    } else {
    }
    return
  }
  func.func @transform_0(%arg0: i32, %arg1: i32) -> (i32, i32, i32) {
    %c0_i32 = arith.constant 0 : i32
    %c0_i32_0 = arith.constant 0 : i32
    %c0_i32_1 = arith.constant 0 : i32
    return %arg0, %c0_i32, %c0_i32_0 : i32, i32, i32
  }
  func.func @transform_1(%arg0: i32, %arg1: i32) -> (i32, i32, i32) {
    %c0_i32 = arith.constant 0 : i32
    %c0_i32_0 = arith.constant 0 : i32
    %c0_i32_1 = arith.constant 0 : i32
    return %arg0, %c0_i32, %c0_i32_0 : i32, i32, i32
  }
  func.func @transform_2(%arg0: i32, %arg1: i32) -> (i32, i32) {
    %c0_i32 = arith.constant 0 : i32
    %c0_i32_0 = arith.constant 0 : i32
    %c0_i32_1 = arith.constant 0 : i32
    return %c0_i32, %c0_i32_0 : i32, i32
  }
  func.func @transform_3(%arg0: i32, %arg1: i32) -> (i32, i32) {
    %c0_i32 = arith.constant 0 : i32
    %c0_i32_0 = arith.constant 0 : i32
    %c0_i32_1 = arith.constant 0 : i32
    return %c0_i32, %c0_i32_0 : i32, i32
  }
  func.func @transform_4(%arg0: i32, %arg1: i32) -> (i32, i32) {
    %c0_i32 = arith.constant 0 : i32
    %c0_i32_0 = arith.constant 0 : i32
    %c0_i32_1 = arith.constant 0 : i32
    return %c0_i32, %c0_i32_0 : i32, i32
  }
  func.func @transform_5(%arg0: i32, %arg1: i32) -> (i32, i32) {
    %c0_i32 = arith.constant 0 : i32
    %c0_i32_0 = arith.constant 0 : i32
    %c0_i32_1 = arith.constant 0 : i32
    return %c0_i32, %c0_i32_0 : i32, i32
  }
  func.func @transform_6(%arg0: i32, %arg1: i32) -> (i32, i32) {
    %c0_i32 = arith.constant 0 : i32
    %c0_i32_0 = arith.constant 0 : i32
    %c0_i32_1 = arith.constant 0 : i32
    return %c0_i32, %c0_i32_0 : i32, i32
  }
  func.func @transform_7(%arg0: i32, %arg1: i32) -> (i32, i32, i32) {
    %c0_i32 = arith.constant 0 : i32
    %c0_i32_0 = arith.constant 0 : i32
    %c0_i32_1 = arith.constant 0 : i32
    return %arg1, %c0_i32, %c0_i32_0 : i32, i32, i32
  }
  func.func @transform_8(%arg0: i32, %arg1: i32) -> (i32, i32, i32) {
    %c0_i32 = arith.constant 0 : i32
    %c0_i32_0 = arith.constant 0 : i32
    %c0_i32_1 = arith.constant 0 : i32
    return %arg1, %c0_i32, %c0_i32_0 : i32, i32, i32
  }
  func.func @transform_9(%arg0: i32, %arg1: i32) -> (i32, i32, i32) {
    %c0_i32 = arith.constant 0 : i32
    %c0_i32_0 = arith.constant 0 : i32
    %c0_i32_1 = arith.constant 0 : i32
    return %arg1, %c0_i32, %c0_i32_0 : i32, i32, i32
  }
  func.func @transform_10(%arg0: i32, %arg1: i32) -> (i32, i32, i32) {
    %c0_i32 = arith.constant 0 : i32
    %c0_i32_0 = arith.constant 0 : i32
    %c0_i32_1 = arith.constant 0 : i32
    return %arg1, %c0_i32, %c0_i32_0 : i32, i32, i32
  }
  func.func @transform_11(%arg0: i32, %arg1: i32) -> (i32, i32, i32) {
    %c0_i32 = arith.constant 0 : i32
    %c0_i32_0 = arith.constant 0 : i32
    %c0_i32_1 = arith.constant 0 : i32
    return %arg1, %c0_i32, %c0_i32_0 : i32, i32, i32
  }
  func.func @transform_12(%arg0: i32, %arg1: i32) -> (i32, i32, i32) {
    %c0_i32 = arith.constant 0 : i32
    %c0_i32_0 = arith.constant 0 : i32
    %c0_i32_1 = arith.constant 0 : i32
    return %arg0, %c0_i32, %c0_i32_0 : i32, i32, i32
  }
}

</mosaic_0001>

<bundles_post_ra>
// kernel: tpu_custom_call.1
= control target key start
LH: loop header
LB: loop body
LE: loop exit
PB: predicated region body
PF: predicated region fallthrough
CT: control target
= control target key end

     0   :  { %s5571_s0 = inlined_call_operand.hbm [shape: f32[4,4,8], index: 0, kind: input, shape index: {}]   ;;  %s5572_s1 = inlined_call_operand.hbm [shape: f32[4,1,16], index: 1, kind: input, shape index: {}]   ;;  %s5573_s2 = inlined_call_operand.hbm [shape: bf16[8,128], index: 2, kind: input, shape index: {}]   ;;  %s5574_s3 = inlined_call_operand.hbm [shape: bf16[16,128], index: 3, kind: input, shape index: {}]   ;;  %s5575_s4 = inlined_call_operand.hbm [shape: f32[13,128], index: 4, kind: input, shape index: {}]   ;;  %s5576_s5 = inlined_call_operand.vmem [shape: f32[128,5], index: 5, kind: input, shape index: {}]   ;;  %s5577_s6 = inlined_call_operand.vmem [shape: f32[1,5], index: 6, kind: input, shape index: {}]   ;;  %s5578_s7 = inlined_call_operand.hbm [shape: bf16[2,128,384], index: 7, kind: input, shape index: {}]   ;;  %s5579_s8 = inlined_call_operand.vmem [shape: bf16[2,128,128], index: 8, kind: input, shape index: {}]   ;;  %s5580_s9 = inlined_call_operand.hbm [shape: bf16[2,128,256], index: 9, kind: input, shape index: {}]   ;;  %s5581_s10 = inlined_call_operand.hbm [shape: bf16[2,256,128], index: 10, kind: input, shape index: {}]   ;;  %s5582_s11 = inlined_call_operand.vmem [shape: f32[2,8,384], index: 11, kind: input, shape index: {}]   ;;  %s5583_s12 = inlined_call_operand.hbm [shape: f32[4,1,5], index: 12, kind: output, shape index: {}]  }
   0x1   :  { %5617 = sst [smem:[#allocation38_spill]] %s5571_s0 }
   0x2   :  { %5618 = sst [smem:[#allocation39_spill]] %s5573_s2 }
   0x3   :  { %5619 = sst [smem:[#allocation40_spill]] %s5574_s3 }
   0x4   :  { %5620 = sst [smem:[#allocation41_spill]] %s5575_s4 }
   0x5   :  { %5621 = sst [smem:[#allocation42_spill]] %s5576_s5 }
   0x6   :  { %5622 = sst [smem:[#allocation43_spill]] %s5577_s6 }
   0x7   :  { %5623 = sst [smem:[#allocation44_spill]] %s5578_s7 }
   0x8   :  { %5624 = sst [smem:[#allocation45_spill]] %s5579_s8 }
   0x9   :  { %5625 = sst [smem:[#allocation46_spill]] %s5582_s11 }
   0xa   :  { %5626 = sst [smem:[#allocation47_spill]] %s5583_s12 }
   0xb   :  { %17 = vsyncpa [#allocation4], 0 }
   0xc   :  { %19 = vsyncpa [#allocation4 + $0x1], 0 }
   0xd   :  { %20 = vsyncpa [#allocation7], 0 }
   0xe   :  { %22 = vsyncpa [#allocation7 + $0x1], 0 }
   0xf   :  { %23 = vsyncpa [#allocation10], 0 }
  0x10   :  { %24 = vsyncpa [#allocation13], 0 }
  0x11   :  { %26 = vsyncpa [#allocation13 + $0x1], 0 }
  0x12   :  { %27 = vsyncpa [#allocation16], 0 }
  0x13   :  { %29 = vsyncpa [#allocation16 + $0x1], 0 }
  0x14   :  { %30 = vsyncpa [#allocation5], 0 }
  0x15   :  { %32 = vsyncpa [#allocation5 + $0x1], 0  ;;  %s4638_s21 = smov 0   ;;  %s4640_s22 = smov 0  }
  0x16   :  { %s4642_s23 = smov 0   ;;  %s4644_s24 = smov 0  }
  0x17   :  { %s4646_s25 = smov 0   ;;  %s4648_s26 = smov 0  }
  0x18   :  { %s4650_s27 = smov 0   ;;  %s4652_s28 = smov 0  }
  0x19   :  { %s4654_s29 = smov 0   ;;  %s4656_s30 = smov 0  }
  0x1a   :  { %s4658_s13 = smov 0  }
  0x1b LB: > { %5627 = sst [smem:[#allocation25_spill]] %s4504_s22  ;;  %s4692_s14 = sadd.s32 4294967295, %s4540_s13   ;;  %s4540_s13 = sphi %s4658_s13, %s38_s13   ;;  %s4536_s30 = sphi %s4656_s30, %s5706_s30   ;;  %s4532_s29 = sphi %s4654_s29, %s5705_s29   ;;  %s4528_s28 = sphi %s4652_s28, %s5704_s28   ;;  %s4524_s27 = sphi %s4650_s27, %s5703_s27   ;;  %s4520_s26 = sphi %s4648_s26, %s5702_s26   ;;  %s4516_s25 = sphi %s4646_s25, %s5701_s25   ;;  %s4512_s24 = sphi %s4644_s24, %s5700_s24   ;;  %s4508_s23 = sphi %s4642_s23, %s5696_s23   ;;  %s4504_s22 = sphi %s4640_s22, %s5695_s22   ;;  %s4500_s21 = sphi %s4638_s21, %s5694_s21  }
  0x1c   : > { %5628 = sst [smem:[#allocation26_spill]] %s4508_s23  ;;  %s3413_s15 = sadd.s32 4294967294, %s4540_s13  }
  0x1d   : > { %5629 = sst [smem:[#allocation27_spill]] %s4512_s24  ;;  %p70_p0 = scmp.ne.s32.totalorder %s4516_s25, %s4512_s24 }
  0x1e   : > { %5630 = sst [smem:[#allocation28_spill]] %s4524_s27  ;;  %p5588_p1 = scmp.eq.s32.totalorder %s4692_s14, 0 }
  0x1f   : > { %5631 = sst [smem:[#allocation29_spill]] %s4528_s28  ;;  %p227_p2 = scmp.ne.s32.totalorder %s4504_s22, %s4500_s21 }
  0x20   : > { %p4702_p4 = por %p5588_p1, %p70_p0  ;;  %p361_p5 = scmp.eq.s32.totalorder %s3413_s15, 3 }
  0x21   : > { %p4708_p6 = por %p227_p2, %p5588_p1  ;;  %p3414_p7 = scmp.ge.s32.totalorder %s4540_s13, 1 }
  0x22   : > { %s5632_s16 = scalar_select %p4702_p4, 1, 0 }
  0x23   : > { %s5634_s17 = scalar_select %p4708_p6, 1, 0 }
  0x24   : > { %5633 = sst [smem:[#allocation30_spill]] %s5632_s16  ;;  %p4713_p8 = por %p361_p5, %p70_p0 }
  0x25   : > { %5635 = sst [smem:[#allocation31_spill]] %s5634_s17  ;;  %p368_p9 = scmp.lt.s32.totalorder %s4540_s13, 5 }
  0x26   : > { %s5636_s18 = scalar_select %p4713_p8, 1, 0 }
  0x27   : > { %p4718_p10 = pnand %p3414_p7, %p368_p9  ;;  %s4542_s20 = smov [#allocation8]  }
  0x28   : > { %5637 = sst [smem:[#allocation32_spill]] %s5636_s18  ;;  %s381_s21 = sshll.u32 %s4542_s20, 4  ;;  %s382_s21 = int_to_ptr.vmem [resolvable:$true] %s381_s21 }
  0x29   : > { %s5638_s19 = scalar_select %p4718_p10, 1, 0 }
  0x2a   : > { %p3869_p11 = pneg %p4718_p10  ;;  %s4543_s15 = smov [#allocation9]  }
  0x2b   : > { %5639 = sst [smem:[#allocation33_spill]] %s5638_s19  ;;  %s391_s24 = sshll.u32 %s4543_s15, 4  ;;  %s4730_s24 = int_to_ptr.vmem [resolvable:$true] %s391_s24 }
  0x2c   : > { %p4726_p12 = pnand %p3869_p11, %p5588_p1  ;;  %s5641_s2 = sld [smem:[#allocation39_spill]] }
  0x2e   : > { %s5640_s12 = scalar_select %p4726_p12, 1, 0 }
  0x2f   : > { %p4740_p0 = pneg %p4726_p12 }
  0x31   : > { %s5642_s20 = scalar_select %p4740_p0, 1, 0 }
  0x32   : > { %s4164_s6 = scalar_lea.hbm %s5641_s2, 64 }
  0x33   : > { %p4165_p13 = scmp.ne.s32.totalorder %s5641_s2, %s4164_s6  ;;  %p4171_p7 = scmp.lt.u32.totalorder %s4164_s6, %s5641_s2 }
  0x35   : > { %p4167_p2 = pnand %p4740_p0, %p4165_p13 }
  0x37   : > { %p4168_p5 = pneg %p4167_p2 }
  0x39   : > { %p4173_p9 = pnand %p4171_p7, %p4168_p5 }
  0x3b   : > { %4176 = shalt.err (!%p4173_p9)
}
  0x3c   : > { %s4177_s28 = scalar_lea.vmem %s382_s21, 64  ;;  %p4185_p8 = scmp.lt.s32.totalorder %s382_s21, %s382_s21 }
  0x3d   : > { %p4178_p11 = scmp.ne.s32.totalorder %s382_s21, %s4177_s28  ;;  %p4186_p6 = scmp.lt.s32.totalorder %s4177_s28, %s4177_s28 }
  0x3f   : > { %p4180_p1 = pnand %p4178_p11, %p4740_p0  ;;  %p4187_p4 = por %p4186_p6, %p4185_p8 }
  0x41   : > { %p4181_p3 = pneg %p4180_p1 }
  0x43   : > { %p4188_p10 = pnand %p4187_p4, %p4181_p3 }
  0x45   : > { %4191 = shalt.err (!%p4188_p10)
}
  0x46   : > { %3872 = dma.hbm_to_vmem [thread:$0]  (!%p4726_p12), %s5641_s2, 64, %s382_s21, [#allocation7]  }
  0x47   : > { %s5643_s3 = sld [smem:[#allocation40_spill]] }
  0x4d   : > { %s4192_s18 = scalar_lea.hbm %s5643_s3, 128 }
  0x4e   : > { %p4193_p1 = scmp.ne.s32.totalorder %s5643_s3, %s4192_s18  ;;  %p4199_p3 = scmp.lt.u32.totalorder %s4192_s18, %s5643_s3 }
  0x50   : > { %p4195_p13 = pnand %p4193_p1, %p4740_p0 }
  0x52   : > { %p4196_p6 = pneg %p4195_p13 }
  0x54   : > { %p4201_p4 = pnand %p4199_p3, %p4196_p6 }
  0x56   : > { %4204 = shalt.err (!%p4201_p4)
}
  0x57   : > { %s4205_s21 = scalar_lea.vmem %s4730_s24, 128  ;;  %p4213_p5 = scmp.lt.s32.totalorder %s4730_s24, %s4730_s24 }
  0x58   : > { %p4206_p8 = scmp.ne.s32.totalorder %s4730_s24, %s4205_s21  ;;  %p4214_p7 = scmp.lt.s32.totalorder %s4205_s21, %s4205_s21 }
  0x5a   : > { %p4208_p10 = pnand %p4206_p8, %p4740_p0  ;;  %p4215_p9 = por %p4214_p7, %p4213_p5 }
  0x5c   : > { %p4209_p2 = pneg %p4208_p10 }
  0x5e   : > { %p4216_p11 = pnand %p4215_p9, %p4209_p2 }
  0x60   : > { %4219 = shalt.err (!%p4216_p11)
}
  0x61   : > { %s5595_s27 = smov 64   ;;  %s5597_s17 = smov 4  }
  0x62   : > { %3875 = dma.hbm_to_vmem [thread:$0]  (!%p4726_p12), %s5643_s3, 128, %s4730_s24, [#allocation10], %s5595_s27, %s5595_s27, %s5597_s17  }
  0x63   : > { %s47_s6 = sadd.s32 1, %s4532_s29  ;;  %p5602_p1 = scmp.eq.s32.totalorder %s4540_s13, 0 }
  0x64   : > { %p4784_p13 = scmp.ge.s32.totalorder %s47_s6, 2  ;;  %s214_s18 = sadd.s32 1, %s4508_s23 }
  0x65   : > { %p221_p6 = scmp.ne.s32.totalorder %s4508_s23, %s4504_s22  ;;  %p5601_p3 = scmp.lt.s32.totalorder %s4540_s13, 4 }
  0x66   : > { %s5644_s8 = scalar_select %p4784_p13, 1, 0 }
  0x67   : > { %s5708_s6 = smov (%p4784_p13, %s47_s6), 0  ;;  %p223_p4 = por %p221_p6, %p5602_p1 }
  0x68   : > { %5645 = sst [smem:[#allocation34_spill]] %s5708_s6  ;;  %s211_s24 = ssub.s32 %s4532_s29, %s5708_s6 }
  0x69   : > { %p212_p8 = scmp.eq.s32.totalorder %s211_s24, 0  ;;  %s4802_s28 = sand.u32 1, %s4508_s23  }
  0x6a   : > { %s3842_s21 = smul.u32 3072, %s4532_s29  ;;  %s5647_s7 = sld [smem:[#allocation44_spill]] }
  0x6b   : > { %s4806_s5 = scalar_select %p212_p8, %s4508_s23, %s214_s18  }
  0x6c   : > { %s3841_s11 = smul.u32 192, %s4802_s28  ;;  %p4816_p10 = pnand %p5601_p3, %p223_p4 }
  0x6d   : > { %5646 = sst [smem:[#allocation35_spill]] %s4806_s5  ;;  %s5649_s18 = sand.u32 1, %s4540_s13  }
  0x6e   : > { %s5648_s15 = scalar_select %p4816_p10, 1, 0 }
  0x6f   : > { %s470_s24 = scalar_lea.vmem [#allocation12], %s3841_s11  ;;  %s4824_s6 = scalar_lea.sflag [#allocation13], %s5649_s18 }
  0x70   : > { %s4812_s2 = scalar_lea.hbm %s5647_s7, %s3842_s21  ;;  %s477_s3 = sshll.u32 %s470_s24, 4  ;;  %s4820_s3 = int_to_ptr.vmem [resolvable:$true] %s477_s3 }
  0x71   : > { %s4220_s27 = scalar_lea.hbm %s4812_s2, 3072  ;;  %p4830_p5 = pneg %p4816_p10 }
  0x72   : > { %p4221_p2 = scmp.ne.s32.totalorder %s4812_s2, %s4220_s27  ;;  %s4225_s11 = scalar_lea.hbm %s5647_s7, 6144 }
  0x73   : > { %p4226_p11 = scmp.lt.u32.totalorder %s4812_s2, %s5647_s7  ;;  %p4227_p6 = scmp.lt.u32.totalorder %s4225_s11, %s4220_s27 }
  0x74   : > { %p4223_p7 = pnand %p4830_p5, %p4221_p2  ;;  %p4229_p8 = scmp.lt.u32.totalorder %s4220_s27, %s4812_s2 }
  0x75   : > { %p4228_p4 = por %p4227_p6, %p4226_p11 }
  0x76   : > { %p4224_p9 = pneg %p4223_p7 }
  0x77   : > { %p4230_p3 = por %p4229_p8, %p4228_p4 }
  0x79   : > { %p4231_p1 = pnand %p4230_p3, %p4224_p9 }
  0x7b   : > { %4234 = shalt.err (!%p4231_p1)
}
  0x7c   : > { %s4235_s18 = scalar_lea.vmem %s4820_s3, 3072  ;;  %s4546_s5 = smov [#allocation12]  }
  0x7d   : > { %p4236_p2 = scmp.ne.s32.totalorder %s4820_s3, %s4235_s18  ;;  %s4240_s21 = sshll.u32 %s4546_s5, 4  ;;  %s4241_s21 = int_to_ptr.vmem [resolvable:$false] %s4240_s21 }
  0x7e   : > { %s4242_s23 = scalar_lea.vmem %s4241_s21, 6144  ;;  %p4243_p12 = scmp.lt.s32.totalorder %s4820_s3, %s4241_s21 }
  0x7f   : > { %p4238_p7 = pnand %p4236_p2, %p4830_p5  ;;  %p4244_p0 = scmp.lt.s32.totalorder %s4242_s23, %s4235_s18 }
  0x81   : > { %p4239_p13 = pneg %p4238_p7  ;;  %p4245_p11 = por %p4244_p0, %p4243_p12 }
  0x83   : > { %p4246_p6 = pnand %p4245_p11, %p4239_p13 }
  0x85   : > { %4249 = shalt.err (!%p4246_p6)
}
  0x86   : > { %s4547_s27 = smov 192   ;;  %s4548_s11 = smov 12  }
  0x87   : > { %3888 = dma.hbm_to_vmem [thread:$0]  (!%p4816_p10), %s4812_s2, 3072, %s4820_s3, %s4824_s6, %s4547_s27, %s4547_s27, %s4548_s11  }
  0x88   : > { %s4549_s24 = smov [#allocation11]   ;;  %s5651_s4 = sld [smem:[#allocation41_spill]] }
  0x89   : > { %s404_s7 = sshll.u32 %s4549_s24, 4  ;;  %p5652_p0 = scmp.ne.s32.totalorder %s5642_s20, 0  ;;  %s405_s7 = int_to_ptr.vmem [resolvable:$true] %s404_s7 }
  0x8e   : > { %s4250_s21 = scalar_lea.hbm %s5651_s4, 256 }
  0x8f   : > { %p4251_p12 = scmp.ne.s32.totalorder %s5651_s4, %s4250_s21  ;;  %p4257_p3 = scmp.lt.u32.totalorder %s4250_s21, %s5651_s4 }
  0x91   : > { %p4253_p1 = pnand %p4251_p12, %p5652_p0 }
  0x93   : > { %p4254_p13 = pneg %p4253_p1 }
  0x95   : > { %p4259_p9 = pnand %p4257_p3, %p4254_p13 }
  0x97   : > { %4262 = shalt.err (!%p4259_p9)
}
  0x98   : > { %s4263_s2 = scalar_lea.vmem %s405_s7, 256  ;;  %p4271_p7 = scmp.lt.s32.totalorder %s405_s7, %s405_s7 }
  0x99   : > { %p4264_p4 = scmp.ne.s32.totalorder %s405_s7, %s4263_s2  ;;  %p4272_p11 = scmp.lt.s32.totalorder %s4263_s2, %s4263_s2 }
  0x9b   : > { %p4266_p8 = pnand %p4264_p4, %p5652_p0  ;;  %p4273_p6 = por %p4272_p11, %p4271_p7 }
  0x9d   : > { %p4267_p2 = pneg %p4266_p8 }
  0x9f   : > { %p4274_p10 = pnand %p4273_p6, %p4267_p2 }
  0xa1   : > { %4277 = shalt.err (!%p4274_p10)
}
  0xa2   : > { %s5613_s3 = smov 128   ;;  %s5615_s22 = smov 8  }
  0xa3   : > { %p5653_p12 = scmp.ne.s32.totalorder %s5640_s12, 0  ;;  %s50_s20 = sadd.s32 1, %s4536_s30 }
  0xa4   : > { %s57_s27 = sadd.s32 1, %s4520_s26  ;;  %p5654_p10 = scmp.ne.s32.totalorder %s5644_s8, 0 }
  0xa5   : > { %3878 = dma.hbm_to_vmem [thread:$0]  (!%p5653_p12), %s5651_s4, 256, %s405_s7, [#allocation10], %s5613_s3, %s5613_s3, %s5615_s22  }
  0xa6   : > { %s5710_s20 = smov (!%p5654_p10, %s50_s20), %s4536_s30  ;;  %p64_p0 = scmp.ne.s32.totalorder %s4520_s26, %s4516_s25 }
  0xa7   : > { %s4883_s11 = sand.u32 1, %s4520_s26   ;;  %p52_p1 = scmp.ge.s32.totalorder %s5710_s20, 2 }
  0xa8   : > { %p5655_p13 = scmp.eq.s32.totalorder %s4540_s13, 0  ;;  %p5656_p9 = scmp.eq.s32.totalorder %s4692_s14, 3 }
  0xa9   : > { %s5712_s20 = smov (%p52_p1, %s5710_s20), 0  ;;  %s3419_s7 = sshll.u32 %s4883_s11, 3 }
  0xaa   : > { %p66_p3 = por %p5655_p13, %p64_p0  ;;  %p4889_p4 = por %p5656_p9, %p64_p0 }
  0xab   : > { %5658 = sst [smem:[#allocation36_spill]] %s5712_s20  ;;  %s3551_s8 = sshll.u32 %s4536_s30, 7 }
  0xac   : > { %s5657_s12 = scalar_select %p4889_p4, 1, 0 }
  0xad   : > { %s54_s24 = ssub.s32 %s4536_s30, %s5712_s20  ;;  %s5659_s0 = sld [smem:[#allocation38_spill]] }
  0xae   : > { %p55_p8 = scmp.eq.s32.totalorder %s54_s24, 0  ;;  %s428_s23 = scalar_lea.vmem [#allocation3], %s3419_s7 }
  0xaf   : > { %s435_s2 = sshll.u32 %s428_s23, 4  ;;  %p5660_p2 = scmp.lt.s32.totalorder %s4540_s13, 4  ;;  %s4913_s2 = int_to_ptr.vmem [resolvable:$true] %s435_s2 }
  0xb0   : > { %s4911_s19 = scalar_select %p55_p8, %s4520_s26, %s57_s27  }
  0xb1   : > { %p4906_p7 = pnand %p5660_p2, %p66_p3  ;;  %s425_s24 = scalar_lea.sflag [#allocation4], %s4883_s11 }
  0xb2   : > { %5662 = sst [smem:[#allocation37_spill]] %s4911_s19 }
  0xb3   : > { %s4902_s18 = scalar_lea.hbm %s5659_s0, %s3551_s8  ;;  %p4280_p6 = pneg %p4906_p7 }
  0xb4   : > { %s4278_s8 = scalar_lea.hbm %s4902_s18, 128  ;;  %s4283_s21 = scalar_lea.hbm %s5659_s0, 256 }
  0xb5   : > { %p4279_p11 = scmp.ne.s32.totalorder %s4902_s18, %s4278_s8  ;;  %p4284_p0 = scmp.lt.u32.totalorder %s4902_s18, %s5659_s0 }
  0xb6   : > { %p4285_p1 = scmp.lt.u32.totalorder %s4283_s21, %s4278_s8  ;;  %p4287_p3 = scmp.lt.u32.totalorder %s4278_s8, %s4902_s18 }
  0xb7   : > { %p4281_p12 = pnand %p4280_p6, %p4279_p11 }
  0xb8   : > { %p4286_p13 = por %p4285_p1, %p4284_p0 }
  0xb9   : > { %p4282_p10 = pneg %p4281_p12 }
  0xba   : > { %p4288_p9 = por %p4287_p3, %p4286_p13 }
  0xbc   : > { %p4289_p8 = pnand %p4288_p9, %p4282_p10 }
  0xbe   : > { %4292 = shalt.err (!%p4289_p8)
}
  0xbf   : > { %s4293_s27 = scalar_lea.vmem %s4913_s2, 128  ;;  %s4552_s7 = smov [#allocation3]  }
  0xc0   : > { %p4294_p2 = scmp.ne.s32.totalorder %s4913_s2, %s4293_s27  ;;  %s4298_s5 = sshll.u32 %s4552_s7, 4  ;;  %s4299_s5 = int_to_ptr.vmem [resolvable:$false] %s4298_s5 }
  0xc1   : > { %s4300_s3 = scalar_lea.vmem %s4299_s5, 256  ;;  %p4301_p4 = scmp.lt.s32.totalorder %s4913_s2, %s4299_s5 }
  0xc2   : > { %p4296_p11 = pnand %p4294_p2, %p4280_p6  ;;  %p4302_p0 = scmp.lt.s32.totalorder %s4300_s3, %s4293_s27 }
  0xc4   : > { %p4297_p12 = pneg %p4296_p11  ;;  %p4303_p1 = por %p4302_p0, %p4301_p4 }
  0xc6   : > { %p4304_p13 = pnand %p4303_p1, %p4297_p12 }
  0xc8   : > { %4307 = shalt.err (!%p4304_p13)
}
  0xc9   : > { %s5663_s8 = smov 4   ;;  %s5664_s21 = smov 64  }
  0xca   : > { %3882 = dma.hbm_to_vmem [thread:$0]  (!%p4906_p7), %s4902_s18, 128, %s4913_s2, %s425_s24, %s5664_s21, %s5664_s21, %s5663_s8  }
  0xcb   : > { %s3422_s23 = sshll.u32 %s4883_s11, 1  ;;  %s3552_s7 = sshll.u32 %s4536_s30, 5 }
  0xcc   : > { %s4951_s3 = scalar_lea.hbm %s5572_s1, %s3552_s7  ;;  %s449_s22 = scalar_lea.vmem [#allocation6], %s3422_s23 }
  0xcd   : > { %s456_s0 = sshll.u32 %s449_s22, 4  ;;  %s5665_s4 = sand.u32 1, %s4540_s13   ;;  %s4953_s0 = int_to_ptr.vmem [resolvable:$true] %s456_s0 }
  0xce   : > { %s4957_s20 = scalar_lea.sflag [#allocation7], %s5665_s4  ;;  %s4308_s19 = scalar_lea.hbm %s4951_s3, 32 }
  0xcf   : > { %p4309_p4 = scmp.ne.s32.totalorder %s4951_s3, %s4308_s19  ;;  %s4313_s2 = scalar_lea.hbm %s5572_s1, 64 }
  0xd0   : > { %p4314_p9 = scmp.lt.u32.totalorder %s4951_s3, %s5572_s1  ;;  %p4315_p8 = scmp.lt.u32.totalorder %s4313_s2, %s4308_s19 }
  0xd1   : > { %p4311_p10 = pnand %p4309_p4, %p4280_p6  ;;  %p4317_p11 = scmp.lt.u32.totalorder %s4308_s19, %s4951_s3 }
  0xd2   : > { %p4316_p2 = por %p4315_p8, %p4314_p9 }
  0xd3   : > { %p4312_p3 = pneg %p4311_p10 }
  0xd4   : > { %p4318_p12 = por %p4317_p11, %p4316_p2 }
  0xd6   : > { %p4319_p0 = pnand %p4318_p12, %p4312_p3 }
  0xd8   : > { %4322 = shalt.err (!%p4319_p0)
}
  0xd9   : > { %s4323_s4 = scalar_lea.vmem %s4953_s0, 32  ;;  %s4553_s22 = smov [#allocation6]  }
  0xda   : > { %p4324_p1 = scmp.ne.s32.totalorder %s4953_s0, %s4323_s4  ;;  %s4328_s23 = sshll.u32 %s4553_s22, 4  ;;  %s4329_s23 = int_to_ptr.vmem [resolvable:$false] %s4328_s23 }
  0xdb   : > { %s4330_s27 = scalar_lea.vmem %s4329_s23, 64  ;;  %p4331_p10 = scmp.lt.s32.totalorder %s4953_s0, %s4329_s23 }
  0xdc   : > { %p4326_p13 = pnand %p4324_p1, %p4280_p6  ;;  %p4332_p9 = scmp.lt.s32.totalorder %s4330_s27, %s4323_s4 }
  0xde   : > { %p4327_p4 = pneg %p4326_p13  ;;  %p4333_p8 = por %p4332_p9, %p4331_p10 }
  0xe0   : > { %p4334_p2 = pnand %p4333_p8, %p4327_p4 }
  0xe2   : > { %4337 = shalt.err (!%p4334_p2)
}
  0xe3   : > { %s4554_s19 = smov 16   ;;  %s4555_s5 = smov 1  }
  0xe4   : > { %3885 = dma.hbm_to_vmem [thread:$0]  (!%p4906_p7), %s4951_s3, 32, %s4953_s0, %s4957_s20, %s4554_s19, %s4554_s19, %s4555_s5  }
  0xe5   : > { %s3426_s11 = sshll.u32 %s4802_s28, 7  ;;  %s3553_s18 = sshll.u32 %s4532_s29, 11 }
  0xe6   : > { %s4990_s7 = scalar_lea.hbm %s5580_s9, %s3553_s18  ;;  %s499_s4 = scalar_lea.vmem [#allocation14], %s3426_s11 }
  0xe7   : > { %s506_s22 = sshll.u32 %s499_s4, 4  ;;  %s4338_s23 = scalar_lea.hbm %s4990_s7, 2048  ;;  %s4994_s22 = int_to_ptr.vmem [resolvable:$true] %s506_s22 }
  0xe8   : > { %p4339_p6 = scmp.ne.s32.totalorder %s4990_s7, %s4338_s23  ;;  %s4343_s16 = scalar_lea.hbm %s5580_s9, 4096 }
  0xe9   : > { %p4344_p11 = scmp.lt.u32.totalorder %s4990_s7, %s5580_s9  ;;  %p4345_p12 = scmp.lt.u32.totalorder %s4343_s16, %s4338_s23 }
  0xea   : > { %p4341_p7 = pnand %p4339_p6, %p4830_p5  ;;  %p4347_p1 = scmp.lt.u32.totalorder %s4338_s23, %s4990_s7 }
  0xeb   : > { %p4346_p0 = por %p4345_p12, %p4344_p11 }
  0xec   : > { %p4342_p3 = pneg %p4341_p7 }
  0xed   : > { %p4348_p13 = por %p4347_p1, %p4346_p0 }
  0xef   : > { %p4349_p4 = pnand %p4348_p13, %p4342_p3 }
  0xf1   : > { %4352 = shalt.err (!%p4349_p4)
}
  0xf2   : > { %s4353_s19 = scalar_lea.vmem %s4994_s22, 2048  ;;  %s4556_s5 = smov [#allocation14]  }
  0xf3   : > { %p4354_p10 = scmp.ne.s32.totalorder %s4994_s22, %s4353_s19  ;;  %s4358_s2 = sshll.u32 %s4556_s5, 4  ;;  %s4359_s2 = int_to_ptr.vmem [resolvable:$false] %s4358_s2 }
  0xf4   : > { %s4360_s24 = scalar_lea.vmem %s4359_s2, 4096  ;;  %p4361_p2 = scmp.lt.s32.totalorder %s4994_s22, %s4359_s2 }
  0xf5   : > { %p4356_p9 = pnand %p4354_p10, %p4830_p5  ;;  %p4362_p6 = scmp.lt.s32.totalorder %s4360_s24, %s4353_s19 }
  0xf7   : > { %p4357_p8 = pneg %p4356_p9  ;;  %p4363_p7 = por %p4362_p6, %p4361_p2 }
  0xf9   : > { %p4364_p11 = pnand %p4363_p7, %p4357_p8 }
  0xfb   : > { %4367 = shalt.err (!%p4364_p11)
}
  0xfc   : > { %p5666_p3 = scmp.ne.s32.totalorder %s5648_s15, 0  ;;  %s5667_s4 = smov 8  }
  0xfd   : > { %s5668_s23 = smov 128   ;;  %s5026_s16 = scalar_lea.hbm %s5581_s10, %s3553_s18 }
  0xfe   : > { %3891 = dma.hbm_to_vmem [thread:$0]  (!%p5666_p3), %s4990_s7, 2048, %s4994_s22, %s4824_s6, %s5668_s23, %s5668_s23, %s5667_s4  }
  0xff   : > { %s520_s3 = scalar_lea.vmem [#allocation15], %s3426_s11  ;;  %s517_s19 = scalar_lea.sflag [#allocation16], %s4802_s28 }
 0x100   : > { %s527_s27 = sshll.u32 %s520_s3, 4  ;;  %s4368_s5 = scalar_lea.hbm %s5026_s16, 2048  ;;  %s5030_s27 = int_to_ptr.vmem [resolvable:$true] %s527_s27 }
 0x101   : > { %p4369_p12 = scmp.ne.s32.totalorder %s5026_s16, %s4368_s5  ;;  %s4373_s18 = scalar_lea.hbm %s5581_s10, 4096 }
 0x102   : > { %p4374_p13 = scmp.lt.u32.totalorder %s5026_s16, %s5581_s10  ;;  %p4375_p4 = scmp.lt.u32.totalorder %s4373_s18, %s4368_s5 }
 0x103   : > { %p4371_p0 = pnand %p4369_p12, %p4830_p5  ;;  %p4377_p9 = scmp.lt.u32.totalorder %s4368_s5, %s5026_s16 }
 0x104   : > { %p4376_p10 = por %p4375_p4, %p4374_p13 }
 0x105   : > { %p4372_p1 = pneg %p4371_p0 }
 0x106   : > { %p4378_p8 = por %p4377_p9, %p4376_p10 }
 0x108   : > { %p4379_p2 = pnand %p4378_p8, %p4372_p1 }
 0x10a   : > { %4382 = shalt.err (!%p4379_p2)
}
 0x10b   : > { %s4383_s11 = scalar_lea.vmem %s5030_s27, 2048  ;;  %s4557_s24 = smov [#allocation15]  }
 0x10c   : > { %p4384_p6 = scmp.ne.s32.totalorder %s5030_s27, %s4383_s11  ;;  %s4388_s4 = sshll.u32 %s4557_s24, 4  ;;  %s4389_s4 = int_to_ptr.vmem [resolvable:$false] %s4388_s4 }
 0x10d   : > { %s4390_s23 = scalar_lea.vmem %s4389_s4, 4096  ;;  %p4391_p12 = scmp.lt.s32.totalorder %s5030_s27, %s4389_s4 }
 0x10e   : > { %p4386_p7 = pnand %p4384_p6, %p4830_p5  ;;  %p4392_p0 = scmp.lt.s32.totalorder %s4390_s23, %s4383_s11 }
 0x110   : > { %p4387_p11 = pneg %p4386_p7  ;;  %p4393_p13 = por %p4392_p0, %p4391_p12 }
 0x112   : > { %p4394_p4 = pnand %p4393_p13, %p4387_p11 }
 0x114   : > { %4397 = shalt.err (!%p4394_p4)
}
 0x115   : > { %3894 = dma.hbm_to_vmem [thread:$0]  (!%p5666_p3), %s5026_s16, 2048, %s5030_s27, %s517_s19, %s5664_s21, %s5664_s21, %s5663_s8  }
 0x116   : > { %s5669_s17 = sld [smem:[#allocation33_spill]] }
 0x11c   : > { %p5670_p5 = scmp.ne.s32.totalorder %s5669_s17, 0 }
 0x11d   : > { %s5671_s0 = sld [smem:[#allocation30_spill]] (!%p5670_p5)  ;;  %s5062_s20 = sand.u32 (!%p5670_p5), 1, %s4516_s25  }
 0x11e   : > { %547 = sbr.rel (%p5670_p5) target bundleno = 5139 (0x1413), region = 68  ;;  %s3433_s3 = sshll.u32 (!%p5670_p5), %s5062_s20, 3 }
 0x11f   : > { %s550_s5 = scalar_lea.sflag (!%p5670_p5), [#allocation4], %s5062_s20  ;;  %s5066_s15 = scalar_lea.vmem (!%p5670_p5), [#allocation3], %s3433_s3 }
 0x123   : > { %p5672_p1 = scmp.ne.s32.totalorder (!%p5670_p5), %s5671_s0, 0 }
 0x125   : > { %4471 = dma.done.wait (%p5672_p1), %s550_s5, 128  }
 0x126   : > { %4473 = vsyncadd (%p5672_p1), %s550_s5, 4294967168  ;;  %s558_s28 = sand.u32 1, %s4692_s14   ;;  %s3434_s8 = sshll.u32 %s5062_s20, 1 }
 0x127   : > { %s559_s21 = scalar_lea.sflag [#allocation7], %s558_s28  ;;  %s5074_s16 = scalar_lea.vmem [#allocation6], %s3434_s8 }
 0x128   : > { %4475 = dma.done.wait (%p5672_p1), %s559_s21, 32  }
 0x129   : > { %4477 = vsyncadd (%p5672_p1), %s559_s21, 4294967264  ;;  %p5673_p3 = scmp.eq.s32.totalorder %s4692_s14, 0 }
 0x12b   : > { %4479 = dma.done.wait (%p5673_p3), [#allocation7], 64   ;;  %p5674_p10 = pmov %p5673_p3 }
 0x12c   : > { %p5675_p9 = pmov %p5673_p3 }
 0x12d   : > { %4481 = vsyncadd (%p5674_p10), [#allocation7], 4294967232 }
 0x12e   : > { %4483 = dma.done.wait (%p5675_p9), [#allocation10], 384   ;;  %p5676_p8 = pmov %p5673_p3 }
 0x12f   : > { %s5677_s27 = sld [smem:[#allocation25_spill]]  ;;  %s5678_s19 = sld [smem:[#allocation31_spill]] }
 0x130   : > { %4485 = vsyncadd (%p5676_p8), [#allocation10], 4294966912  ;;  %s580_s18 = scalar_lea.sflag [#allocation13], %s558_s28 }
 0x135   : > { %s581_s6 = sand.u32 1, %s5677_s27   ;;  %p5679_p2 = scmp.ne.s32.totalorder %s5678_s19, 0 }
 0x136   : > { %s3843_s7 = smul.u32 192, %s581_s6 }
 0x138   : > { %s5089_s22 = scalar_lea.vmem [#allocation12], %s3843_s7 }
 0x139   : > { %4487 = dma.done.wait (%p5679_p2), %s580_s18, 5120  }
 0x13a   : > { %4489 = vsyncadd (%p5679_p2), %s580_s18, 4294962176  ;;  %s3438_s2 = sshll.u32 %s581_s6, 7  ;;  %s598_s24 = scalar_lea.sflag [#allocation16], %s581_s6 }
 0x13b   : > { %s5095_s11 = scalar_lea.vmem [#allocation14], %s3438_s2  ;;  %s5097_s4 = scalar_lea.vmem [#allocation15], %s3438_s2 }
 0x13c   : > { %4491 = dma.done.wait (%p5679_p2), %s598_s24, 2048  }
 0x13d   : > { %4493 = vsyncadd (%p5679_p2), %s598_s24, 4294965248  ;;  %s5680_s14 = sld [smem:[#allocation28_spill]]  ;;  %s5681_s28 = sld [smem:[#allocation45_spill]] }
 0x13e   : > { %s5682_s7 = sld [smem:[#allocation46_spill]]  ;;  %s5115_s2 = scalar_lea.vmem [#allocation17], %s3434_s8 }
 0x143   : > { %p674_p6 = scmp.lt.s32.totalorder %s5680_s14, 1  ;;  %p3444_p7 = scmp.ne.s32.totalorder %s5680_s14, 0 }
 0x144   : > { %v699_v0 = vld [vmem:[#allocation8] sm:$0xf] (!%p3444_p7)  ;;  %vm708_vm0 = vcmask (!%p3444_p7), 1043456   ;;  %v4020_v1 = vld [vmem:[%s5066_s15] sm:$0xff] (!%p3444_p7)   ;;  %v4558_v2 = vmov (!%p3444_p7), 0.0   ;;  %vm4559_vm1 = vmmov (!%p3444_p7), 0   ;;  %v700_v18 = vlaneseq (!%p3444_p7) }
 0x145   : > { %s675_s23 = scalar_select %p674_p6, %s5680_s14, 1 }
 0x146   : > { %689 = sbr.rel (%p3444_p7) target bundleno = 556 (0x22c), region = 104  ;;  %3650 = vmatprep.subr.bf16.mxu0 (!%p3444_p7), %v4558_v2  ;;  %v710_v3 = vsel (!%p3444_p7), %vm708_vm0, %v699_v0, 0  ;;  %3652 = vmatprep.mubr.msk.bf16.mxu0 (!%p3444_p7), %vm4559_vm1, %v4558_v2  ;;  %v698_v4 = vpack.c.bf16 (!%p3444_p7), %v4020_v1, %v4020_v1  ;;  %vm704_vm2 = vcmask (!%p3444_p7), 64512   ;;  %v4021_v5 = vld [vmem:[#allocation9] sm:$0xff] (!%p3444_p7)   ;;  %v752_v6 = vld [vmem:[%s5074_s16] sm:$0x1] (!%p3444_p7) }
 0x147   : > { %s3555_s17 = sshll.u32 %s675_s23, 6  ;;  %s3844_s0 = smul.u32 24, %s675_s23  ;;  %3651 = vmatpush3.bf16.msra.mxu0 (!%p3444_p7), %v710_v3  ;;  %3656 = vmatprep.subr.bf16.mxu1 (!%p3444_p7), %v4558_v2  ;;  %v753_v7 = vld [vmem:[%s5074_s16 + $0x1] sm:$0x1] (!%p3444_p7)  ;;  %v754_v8 = vpack.c.bf16 (!%p3444_p7), %v752_v6, %v752_v6  ;;  %vm767_vm3 = vcmask (!%p3444_p7), 1041409   ;;  %vm776_vm4 = vcmask (!%p3444_p7), 130048  }
 0x148   : > { %s5108_s21 = scalar_lea.vmem %s5681_s28, %s3555_s17  ;;  %3658 = vmatprep.mubr.msk.bf16.mxu1 (!%p3444_p7), %vm4559_vm1, %v4558_v2  ;;  %3657 = vmatpush3.bf16.msra.mxu1 (!%p3444_p7), %v4021_v5  ;;  %v755_v9 = vpack.c.bf16 (!%p3444_p7), %v753_v7, %v753_v7  ;;  %v690_v15 = vld [vmem:[#allocation11] sm:$0xff] (!%p3444_p7)  ;;  %v701_v19 = vshrl.u32 (!%p3444_p7), %v700_v18, 7  ;;  %v691_v23 = vld [vmem:[#allocation11 + $0x8] sm:$0x1f] (!%p3444_p7) }
 0x149   : > { %s5113_s18 = scalar_lea.vmem %s5682_s7, %s3844_s0  ;;  %v764_v10 = vunpack.c.l.b16 (!%p3444_p7), %v754_v8  ;;  %v821_v16 = vrot.slane (!%p3444_p7), %v690_v15, 7  ;;  %v836_v27 = vrot.slane (!%p3444_p7), %v691_v23, 4  ;;  %v832_v36 = vrot.slane (!%p3444_p7), %v690_v15, 2 }
 0x14a   : > { %3653 = vmatmul.mubr.msk.bf16.vlgmr.msra.gmra.mrb[0].mxu0 (!%p3444_p7), %vm704_vm2, %v698_v4  ;;  %v765_v11 = vunpack.c.l.b16 (!%p3444_p7), %v755_v9  ;;  %v702_v20 = vsub.s32 (!%p3444_p7), 3, %v701_v19  ;;  %v827_v21 = vsub.s32 (!%p3444_p7), 1, %v701_v19  ;;  %v760_v29 = vsub.s32 (!%p3444_p7), 4, %v701_v19 }
 0x14b   : > { %v823_v17 = vadd.f32 (!%p3444_p7), %v821_v16, %v690_v15  ;;  %v843_v37 = vrot.slane (!%p3444_p7), %v690_v15, 1  ;;  %v846_v40 = vrot.slane (!%p3444_p7), %v691_v23, 3 }
 0x14c   : > { %v766_v12 = vrot.slane (!%p3444_p7), %v765_v11, 7  ;;  %v703_v22 = vrot.slane (!%p3444_p7), %v690_v15, %v702_v20  ;;  %v828_v24 = vrot.slane (!%p3444_p7), %v690_v15, %v827_v21  ;;  %v761_v35 = vrot.slane (!%p3444_p7), %v690_v15, %v760_v29 }
 0x14d   : > { %824 = vst [vmem:[#allocation2] sm:$0x1] %v823_v17  ;;  %840 = vst [vmem:[#allocation2 + $0x6] sm:$0x1] %v823_v17 }
 0x14e   : > { %v768_v13 = vsel %vm767_vm3, %v766_v12, %v764_v10 }
 0x14f   : > { %v769_v14 = vpack.c.b16 %v768_v13, %v768_v13 }
 0x151   : > { %3659 = vmatmul.mubr.msk.bf16.vlgmr.msra.gmra.mrb[0].mxu1 %vm776_vm4, %v769_v14 }
 0x21d   : > { %v746_v25 = vpop.f32.mrb[0].mxu0 }
 0x21e   : > { %v747_v26 = vadd.f32 %v746_v25, %v703_v22  ;;  %v3654_v28 = vpop.f32.mrb[1].mxu0 }
 0x21f   : > { %v749_v30 = vpop.f32.mrb[2].mxu0 }
 0x220   : > { %v829_v31 = vadd.f32 %v828_v24, %v747_v26  ;;  %v3655_v32 = vpop.f32.mrb[3].mxu0 }
 0x222   : > { %v830_v33 = vadd.f32 %v829_v31, %v691_v23  ;;  %v841_v34 = vadd.f32 %v836_v27, %v829_v31 }
 0x224   : > { %831 = vst [vmem:[#allocation2 + $0x1] sm:$0xf] %v830_v33  ;;  %842 = vst [vmem:[#allocation2 + $0x3] sm:$0xf0] %v841_v34  ;;  %v814_v38 = vpop.f32.mrb[0].mxu1 }
 0x225   : > { %v815_v39 = vadd.f32 %v814_v38, %v761_v35  ;;  %v3660_v41 = vpop.f32.mrb[1].mxu1 }
 0x226   : > { %v817_v42 = vpop.f32.mrb[2].mxu1 }
 0x227   : > { %v834_v43 = vadd.f32 %v832_v36, %v815_v39  ;;  %v845_v44 = vadd.f32 %v843_v37, %v815_v39  ;;  %v3661_v45 = vpop.f32.mrb[3].mxu1 }
 0x229   : > { %v838_v46 = vadd.f32 %v836_v27, %v834_v43  ;;  %v848_v47 = vadd.f32 %v846_v40, %v845_v44 }
 0x22b   : > { %839 = vst [vmem:[#allocation2 + $0x5] sm:$0x1] %v838_v46  ;;  %849 = vst [vmem:[#allocation2 + $0xa] sm:$0x2] %v848_v47 }
 0x22c PF: > { %vm857_vm5 = vcmask 1043456   ;;  %v4032_v51 = vld [vmem:[%s5089_s22 + $0x4] ss:$12 sps:$4 sm:$0xff]   ;;  %v4034_v52 = vld [vmem:[%s5089_s22] ss:$12 sps:$4 sm:$0xff]   ;;  %v4560_v53 = vmov 0.0   ;;  %v881_v26 = vlaneseq }
 0x22d   : > { %3662 = vmatprep.subr.bf16.mxu1 %v4560_v53  ;;  %v4035_v54 = vld [vmem:[%s5089_s22 + $0x8] ss:$12 sps:$4 sm:$0xff]   ;;  %1066 = vmatprep.subr.bf16.mxu0 %v4032_v51  ;;  %v4038_v1 = vld [vmem:[%s5089_s22 + $0x18] ss:$12 sps:$4 sm:$0xff]   ;;  %v4039_v2 = vld [vmem:[%s5089_s22 + $0x20] ss:$12 sps:$4 sm:$0xff]  }
 0x22e   : > { %v4036_v55 = vld [vmem:[%s5089_s22 + $0x1c] ss:$12 sps:$4 sm:$0xff]   ;;  %1067 = vmatpush1.bf16.msra.mxu0 %v4034_v52  ;;  %3663 = vmatpush3.bf16.msra.mxu1 %v4035_v54  ;;  %v4040_v3 = vld [vmem:[%s5089_s22 + $0x34] ss:$12 sps:$4 sm:$0xff]   ;;  %v4043_v5 = vld [vmem:[%s5089_s22 + $0x38] ss:$12 sps:$4 sm:$0xff]  }
 0x22f   : > { %1068 = vmatprep.subr.bf16.mxu0 %v4036_v55  ;;  %3664 = vmatprep.subr.bf16.mxu1 %v4560_v53  ;;  %v4042_v4 = vld [vmem:[%s5089_s22 + $0x30] ss:$12 sps:$4 sm:$0xff]   ;;  %v4044_v6 = vld [vmem:[%s5089_s22 + $0x4c] ss:$12 sps:$4 sm:$0xff]   ;;  %v4046_v7 = vld [vmem:[%s5089_s22 + $0x48] ss:$12 sps:$4 sm:$0xff]  }
 0x230   : > { %v4047_v8 = vld [vmem:[%s5089_s22 + $0x50] ss:$12 sps:$4 sm:$0xff]   ;;  %v4050_v10 = vld [vmem:[%s5089_s22 + $0x60] ss:$12 sps:$4 sm:$0xff]   ;;  %v4051_v11 = vld [vmem:[%s5089_s22 + $0x68] ss:$12 sps:$4 sm:$0xff]  }
 0x231   : > { %v4048_v9 = vld [vmem:[%s5089_s22 + $0x64] ss:$12 sps:$4 sm:$0xff]   ;;  %v4052_v12 = vld [vmem:[%s5089_s22 + $0x7c] ss:$12 sps:$4 sm:$0xff]   ;;  %v4055_v14 = vld [vmem:[%s5089_s22 + $0x80] ss:$12 sps:$4 sm:$0xff]  }
 0x232   : > { %v854_v48 = vld [vmem:[#allocation2 + $0x8] sm:$0xf]  ;;  %v853_v50 = vld [vmem:[#allocation2] sm:$0xff]  ;;  %1069 = vmatpush1.bf16.msra.mxu0 %v4038_v1  ;;  %3665 = vmatpush3.bf16.msra.mxu1 %v4039_v2  ;;  %v4561_v16 = vmov 0   ;;  %vm4562_vm6 = vmmov 0   ;;  %v5168_v29 = vshrl.u32 %v881_v26, 7 }
 0x233   : > { %v858_v49 = vsel %vm857_vm5, %v854_v48, 0.0  ;;  %3666 = vmatprep.subr.bf16.mxu1 %v4560_v53  ;;  %1070 = vmatprep.subr.bf16.mxu0 %v4040_v3  ;;  %v4054_v13 = vld [vmem:[%s5089_s22 + $0x78] ss:$12 sps:$4 sm:$0xff]   ;;  %v4056_v15 = vld [vmem:[%s5089_s22 + $0x94] ss:$12 sps:$4 sm:$0xff]   ;;  %v5188_v46 = vld [vmem:[%s5113_s18 + $0x8] sm:$0xff] }
 0x234   : > { %859 = vadd.xlane.f32.xlu0 %v858_v49  ;;  %1098 = vmatprep.mubr.bf16.mxu0 %v4561_v16  ;;  %v4058_v17 = vld [vmem:[%s5089_s22 + $0x90] ss:$12 sps:$4 sm:$0xff]   ;;  %v4059_v18 = vld [vmem:[%s5089_s22 + $0x98] ss:$12 sps:$4 sm:$0xff]   ;;  %v4062_v20 = vld [vmem:[%s5089_s22 + $0xa8] ss:$12 sps:$4 sm:$0xff]  }
 0x235   : > { %3678 = vmatprep.mubr.msk.bf16.mxu1 %vm4562_vm6, %v4560_v53  ;;  %v4060_v19 = vld [vmem:[%s5089_s22 + $0xac] ss:$12 sps:$4 sm:$0xff]   ;;  %v4063_v21 = vld [vmem:[%s5089_s22 + $0xb0] ss:$12 sps:$4 sm:$0xff]   ;;  %v883_v30 = vsub.s32 0, %v5168_v29  ;;  %v5172_v31 = vld [vmem:[%s5113_s18] sm:$0xff] }
 0x236   : > { %1071 = vmatpush1.bf16.msra.mxu0 %v4042_v4  ;;  %3667 = vmatpush3.bf16.msra.mxu1 %v4043_v5  ;;  %v889_v35 = vsub.s32 1, %v5168_v29  ;;  %v5184_v44 = vsub.s32 6, %v5168_v29  ;;  %v852_v45 = vld [vmem:[%s5113_s18 + $0x10] sm:$0xff]  ;;  %vm1150_vm7 = vcmask 261120   ;;  %vm1833_vm8 = vcmask 1041408   ;;  %s4563_s15 = smov 96  }
 0x237   : > { %3668 = vmatprep.subr.bf16.mxu1 %v4560_v53  ;;  %1072 = vmatprep.subr.bf16.mxu0 %v4044_v6  ;;  %v884_v34 = vrot.slane %v5172_v31, %v883_v30  ;;  %vm1243_vm9 = vcmask 1045504   ;;  %vm1227_vm10 = vcmask 46080   ;;  %vm1239_vm11 = vcmask 48128   ;;  %s4564_s8 = smov 64   ;;  %s4565_s16 = smov 32  }
 0x238   : > { %855 = vadd.xlane.f32.xlu0 %v853_v50  ;;  %v890_v39 = vrot.slane %v5172_v31, %v889_v35  ;;  %v937_v47 = vrot.slane %v852_v45, %v5184_v44  ;;  %v929_v51 = vrot.slane %v5172_v31, %v5184_v44  ;;  %vm1828_vm12 = vcmask 523264   ;;  %s5683_s19 = sld [smem:[#allocation28_spill]] }
 0x239   : > { %vm1830_vm13 = vcmask 785408  }
 0x23a   : > { %1073 = vmatpush1.bf16.msra.mxu0 %v4046_v7  ;;  %3669 = vmatpush3.bf16.msra.mxu1 %v4047_v8 }
 0x23b   : > { %3670 = vmatprep.subr.bf16.mxu1 %v4560_v53  ;;  %1074 = vmatprep.subr.bf16.mxu0 %v4048_v9 }
 0x23e   : > { %1075 = vmatpush1.bf16.msra.mxu0 %v4050_v10  ;;  %3671 = vmatpush3.bf16.msra.mxu1 %v4051_v11  ;;  %p3544_p11 = scmp.ne.s32.totalorder %s5683_s19, 1 }
 0x23f   : > { %1076 = vmatprep.subr.bf16.mxu0 %v4052_v12  ;;  %3672 = vmatprep.subr.bf16.mxu1 %v4560_v53  ;;  %vm3027_vm14 = vcmask (!%p3544_p11), 1040384   ;;  %s5684_s24 = sld [smem:[#allocation42_spill]] (!%p3544_p11)  ;;  %vm4567_vm15 = vmmov (!%p3544_p11), 0   ;;  %vm3170_vm0 = vcmask (!%p3544_p11), 32768  }
 0x242   : > { %1077 = vmatpush1.bf16.msra.mxu0 %v4054_v13  ;;  %3673 = vmatpush3.bf16.msra.mxu1 %v4055_v14 }
 0x243   : > { %1078 = vmatprep.subr.bf16.mxu0 %v4056_v15  ;;  %3674 = vmatprep.subr.bf16.mxu1 %v4560_v53 }
 0x246   : > { %1079 = vmatpush1.bf16.msra.mxu0 %v4058_v17  ;;  %3675 = vmatpush3.bf16.msra.mxu1 %v4059_v18 }
 0x247   : > { %1080 = vmatprep.subr.bf16.mxu0 %v4060_v19  ;;  %3676 = vmatprep.subr.bf16.mxu1 %v4560_v53 }
 0x24a   : > { %1081 = vmatpush1.bf16.msra.mxu0 %v4062_v20  ;;  %3677 = vmatpush3.bf16.msra.mxu1 %v4063_v21 }
 0x24b   : > { %3682 = vmatprep.subr.mxu1 %v4560_v53  ;;  %3722 = vmatprep.subr.mxu0 %v4560_v53 }
 0x2c1   : > { %v860_v56 = vpop.xlane.xlu0 %859 }
 0x2c2   : > { %v863_v57 = vmul.f32 0.0078125, %v860_v56 }
 0x2c4   : > { %v5128_v60 = vsub.f32 %v854_v48, %v863_v57  ;;  %v933_v48 = vrot.slane %v5188_v46, %v5184_v44 }
 0x2c5   : > { %v856_v58 = vpop.xlane.xlu0 %855 }
 0x2c6   : > { %v862_v59 = vmul.f32 0.0078125, %v856_v58  ;;  %v867_v63 = vmul.f32 %v5128_v60, %v5128_v60 }
 0x2c8   : > { %v5130_v61 = vsub.f32 %v853_v50, %v862_v59  ;;  %v870_v0 = vsel %vm857_vm5, %v867_v63, 0.0 }
 0x2ca   : > { %v866_v62 = vmul.f32 %v5130_v61, %v5130_v61 }
 0x2cc   : > { %868 = vadd.xlane.f32.xlu1 %v866_v62 }
 0x2d0   : > { %871 = vadd.xlane.f32.xlu1 %v870_v0 }
 0x359   : > { %v869_v22 = vpop.xlane.xlu1 %868 }
 0x35a   : > { %v873_v23 = vmul.f32 0.0078125, %v869_v22 }
 0x35c   : > { %v875_v24 = vadd.f32 1e-05, %v873_v23 }
 0x35d   : > { %v872_v25 = vpop.xlane.xlu1 %871 }
 0x35e   : > { %4112 = vrsqrt.f32 %v875_v24  ;;  %v874_v27 = vmul.f32 0.0078125, %v872_v25 }
 0x360   : > { %v876_v28 = vadd.f32 1e-05, %v874_v27 }
 0x362   : > { %4114 = vrsqrt.f32 %v876_v28 }
 0x368   : > { %v4113_v32 = vpop.eup %4112 }
 0x369   : > { %v879_v33 = vmul.f32 %v4113_v32, %v5130_v61 }
 0x36b   : > { %v885_v38 = vmul.f32 %v884_v34, %v879_v33 }
 0x36c   : > { %v4115_v36 = vpop.eup %4114 }
 0x36d   : > { %v880_v37 = vmul.f32 %v4115_v36, %v5128_v60  ;;  %v891_v41 = vadd.f32 %v890_v39, %v885_v38 }
 0x36f   : > { %v886_v40 = vmul.f32 %v884_v34, %v880_v37 }
 0x371   : > { %v892_v42 = vadd.f32 %v890_v39, %v886_v40 }
 0x373   : > { %v893_v43 = vpack.c.bf16 %v892_v42, %v891_v41 }
 0x375   : > { %1099 = vmatmul.mubr.bf16.vlgmr.msra.gmra.mrb[0].mxu0 %v893_v43  ;;  %3679 = vmatmul.mubr.bf16.vlgmr.msra.gmra.mrb[0].mxu1 %v893_v43 }
 0x376   : > { %3684 = vmatprep.mubr.msk.f32.mxu1 %vm4562_vm6, %v4560_v53  ;;  %3724 = vmatprep.mubr.msk.f32.mxu0 %vm4562_vm6, %v4560_v53 }
 0x448   : > { %v1100_v49 = vpop.f32.mrb[0].mxu0  ;;  %v1143_v50 = vpop.f32.mrb[0].mxu1 }
 0x449   : > { %v5195_v52 = vadd.f32 %v1143_v50, %v937_v47  ;;  %v1102_v54 = vpop.f32.mrb[1].mxu0  ;;  %v3680_v55 = vpop.f32.mrb[1].mxu1  ;;  %v5201_v0 = vadd.f32 %v1100_v49, %v929_v51 }
 0x44a   : > { %v5197_v56 = vadd.f32 %v1102_v54, %v933_v48  ;;  %v1104_v57 = vpop.f32.mrb[2].mxu0  ;;  %v1146_v58 = vpop.f32.mrb[2].mxu1 }
 0x44b   : > { %v1105_v59 = vadd.f32 %v1104_v57, %v929_v51  ;;  %v1147_v60 = vadd.f32 %v1146_v58, %v937_v47  ;;  %v1106_v61 = vpop.f32.mrb[3].mxu0  ;;  %v3681_v62 = vpop.f32.mrb[3].mxu1  ;;  %v1927_v2 = vrot.slane %v5195_v52, 6  ;;  %v1834_v8 = vrot.slane %v5201_v0, 6 }
 0x44c   : > { %v1107_v63 = vadd.f32 %v1106_v61, %v933_v48  ;;  %3683 = vmatpush3.xpose.msk.msra.mxu1 %vm1150_vm7, %v5197_v56  ;;  %v1838_v3 = vrot.slane %v5197_v56, 6 }
 0x44d   : > { %v1928_v1 = vrot.slane %v1147_v60, 6  ;;  %3687 = vmatprep.subr.mxu1 %v4560_v53  ;;  %v1835_v5 = vrot.slane %v1105_v59, 6 }
 0x44e   : > { %v1839_v4 = vrot.slane %v1107_v63, 6 }
 0x44f   : > { %3685 = vmatmul.mubr.msk.f32.vlgmr.msra.gmra.mrb[4].mxu1 %vm1150_vm7, %v5201_v0  ;;  %v5209_v6 = vsel %vm1833_vm8, %v1927_v2, %v1928_v1  ;;  %v5224_v9 = vsel %vm1833_vm8, %v1834_v8, %v1835_v5 }
 0x450   : > { %v5212_v7 = vsel %vm1833_vm8, %v1838_v3, %v1839_v4  ;;  %3688 = vmatpush3.msk.msra.mxu1 %vm1243_vm9, %v5195_v52  ;;  %3689 = vmatprep.mubr.msk.f32.mxu1 %vm4562_vm6, %v4560_v53 }
 0x451   : > { %3723 = vmatpush3.xpose.msk.msra.mxu0 %vm1150_vm7, %v5212_v7  ;;  %3692 = vmatprep.subr.mxu1 %v4560_v53 }
 0x452   : > { %3732 = vmatprep.subr.mxu0 %v4560_v53 }
 0x454   : > { %3725 = vmatmul.mubr.msk.f32.vlgmr.msra.gmra.mrb[4].mxu0 %vm1150_vm7, %v5224_v9 }
 0x455   : > { %3734 = vmatprep.mubr.msk.f32.mxu0 %vm4562_vm6, %v4560_v53 }
 0x522   : > { %v1223_v10 = vpop.f32.mrb[4].mxu1 }
 0x523   : > { %v3686_v11 = vpop.f32.mrb[5].mxu1  ;;  %v1228_v12 = vsel %vm1227_vm10, %v1223_v10, -inf }
 0x524   : > { %1229 = vmax.xlane.f32.xlu0 %v1228_v12 }
 0x527   : > { %v5231_v13 = vpop.f32.mrb[4].mxu0 }
 0x528   : > { %v3726_v14 = vpop.f32.mrb[5].mxu0  ;;  %v1915_v51 = vsel %vm1227_vm10, %v5231_v13, -inf }
 0x53a   : > { %1319 = vrot.lane.b32.xlu0 %v5197_v56, %s4563_s15 }
 0x5b1   : > { %v1230_v15 = vpop.xlane.xlu0 %1229 }
 0x5b2   : > { %v1231_v17 = vsub.f32 %v1223_v10, %v1230_v15 }
 0x5b4   : > { %v1232_v18 = vmul.f32 1.442695, %v1231_v17 }
 0x5b5   : > { %v1320_v24 = vpop.permute.xlu0 %1319 }
 0x5b6   : > { %4116 = vpow2.f32 %v1232_v18 }
 0x5c0   : > { %v4117_v19 = vpop.eup %4116 }
 0x5c1   : > { %v1234_v20 = vsel %vm1227_vm10, %v4117_v19, 0.0 }
 0x5c2   : > { %1235 = vadd.xlane.f32.xlu1 %v1234_v20 }
 0x5d3   : > { %1317 = vrot.lane.b32.xlu1 %v5201_v0, %s4563_s15 }
 0x64f   : > { %v1236_v21 = vpop.xlane.xlu1 %1235 }
 0x650   : > { %4118 = vrcp.f32 %v1236_v21 }
 0x653   : > { %v1318_v25 = vpop.permute.xlu1 %1317 }
 0x65a   : > { %v4119_v22 = vpop.eup %4118 }
 0x65b   : > { %v1238_v23 = vmul.f32 %v4119_v22, %v4117_v19 }
 0x65d   : > { %3690 = vmatmul.mubr.msk.f32.vlgmr.msra.gmra.mrb[6].mxu1 %vm1239_vm11, %v1238_v23 }
 0x65e   : > { %3693 = vmatpush3.xpose.msk.msra.mxu1 %vm1150_vm7, %v1320_v24  ;;  %3694 = vmatprep.mubr.msk.f32.mxu1 %vm4562_vm6, %v4560_v53 }
 0x65f   : > { %3697 = vmatprep.subr.mxu1 %v4560_v53 }
 0x661   : > { %3695 = vmatmul.mubr.msk.f32.vlgmr.msra.gmra.mrb[8].mxu1 %vm1150_vm7, %v1318_v25 }
 0x662   : > { %3699 = vmatprep.mubr.msk.f32.mxu1 %vm4562_vm6, %v4560_v53 }
 0x730   : > { %v5246_v26 = vpop.f32.mrb[6].mxu1 }
 0x731   : > { %v3691_v27 = vpop.f32.mrb[7].mxu1 }
 0x734   : > { %v1391_v28 = vpop.f32.mrb[8].mxu1 }
 0x735   : > { %v3696_v30 = vpop.f32.mrb[9].mxu1  ;;  %v1395_v32 = vsel %vm1227_vm10, %v1391_v28, -inf }
 0x736   : > { %1396 = vmax.xlane.f32.xlu1 %v1395_v32 }
 0x747   : > { %1485 = vrot.lane.b32.xlu1 %v5197_v56, %s4564_s8 }
 0x74b   : > { %1483 = vrot.lane.b32.xlu1 %v5201_v0, %s4564_s8 }
 0x7c3   : > { %v1397_v33 = vpop.xlane.xlu1 %1396 }
 0x7c4   : > { %v1398_v34 = vsub.f32 %v1391_v28, %v1397_v33 }
 0x7c6   : > { %v1399_v35 = vmul.f32 1.442695, %v1398_v34 }
 0x7c7   : > { %v1486_v41 = vpop.permute.xlu1 %1485 }
 0x7c8   : > { %4120 = vpow2.f32 %v1399_v35 }
 0x7cb   : > { %v1484_v43 = vpop.permute.xlu1 %1483 }
 0x7d2   : > { %v4121_v36 = vpop.eup %4120 }
 0x7d3   : > { %v1401_v37 = vsel %vm1227_vm10, %v4121_v36, 0.0 }
 0x7d4   : > { %1402 = vadd.xlane.f32.xlu0 %v1401_v37 }
 0x7ea   : > { %1406 = vrot.lane.b32.xlu0 %v5195_v52, %s4563_s15 }
 0x861   : > { %v1403_v38 = vpop.xlane.xlu0 %1402 }
 0x862   : > { %4122 = vrcp.f32 %v1403_v38 }
 0x865   : > { %v1407_v39 = vpop.permute.xlu0 %1406 }
 0x866   : > { %3698 = vmatpush3.msk.msra.mxu1 %vm1243_vm9, %v1407_v39 }
 0x867   : > { %3702 = vmatprep.subr.mxu1 %v4560_v53 }
 0x86c   : > { %v4123_v40 = vpop.eup %4122 }
 0x86d   : > { %v1405_v42 = vmul.f32 %v4123_v40, %v4121_v36 }
 0x86f   : > { %3700 = vmatmul.mubr.msk.f32.vlgmr.msra.gmra.mrb[10].mxu1 %vm1239_vm11, %v1405_v42 }
 0x870   : > { %3703 = vmatpush3.xpose.msk.msra.mxu1 %vm1150_vm7, %v1486_v41  ;;  %3704 = vmatprep.mubr.msk.f32.mxu1 %vm4562_vm6, %v4560_v53 }
 0x871   : > { %3707 = vmatprep.subr.mxu1 %v4560_v53 }
 0x873   : > { %3705 = vmatmul.mubr.msk.f32.vlgmr.msra.gmra.mrb[12].mxu1 %vm1150_vm7, %v1484_v43 }
 0x874   : > { %3709 = vmatprep.mubr.msk.f32.mxu1 %vm4562_vm6, %v4560_v53 }
 0x942   : > { %v5266_v45 = vpop.f32.mrb[10].mxu1 }
 0x943   : > { %v3701_v47 = vpop.f32.mrb[11].mxu1 }
 0x946   : > { %v1557_v48 = vpop.f32.mrb[12].mxu1 }
 0x947   : > { %v3706_v49 = vpop.f32.mrb[13].mxu1  ;;  %v1561_v50 = vsel %vm1227_vm10, %v1557_v48, -inf }
 0x948   : > { %1562 = vmax.xlane.f32.xlu1 %v1561_v50 }
 0x959   : > { %1651 = vrot.lane.b32.xlu1 %v5197_v56, %s4565_s16 }
 0x95d   : > { %1649 = vrot.lane.b32.xlu1 %v5201_v0, %s4565_s16 }
 0x961   : > { %2005 = vrot.lane.b32.xlu1 %v5224_v9, %s4563_s15 }
 0x965   : > { %2171 = vrot.lane.b32.xlu1 %v5224_v9, %s4564_s8 }
 0x969   : > { %2337 = vrot.lane.b32.xlu1 %v5224_v9, %s4565_s16 }
 0x98d   : > { %1916 = vmax.xlane.f32.xlu1 %v1915_v51 }
 0x9d5   : > { %v1563_v54 = vpop.xlane.xlu1 %1562 }
 0x9d6   : > { %v1564_v55 = vsub.f32 %v1557_v48, %v1563_v54 }
 0x9d8   : > { %v1565_v57 = vmul.f32 1.442695, %v1564_v55 }
 0x9d9   : > { %v1652_v59 = vpop.permute.xlu1 %1651 }
 0x9da   : > { %4124 = vpow2.f32 %v1565_v57 }
 0x9dd   : > { %v1650_v61 = vpop.permute.xlu1 %1649 }
 0x9e1   : > { %v2006_v63 = vpop.permute.xlu1 %2005 }
 0x9e4   : > { %v4125_v56 = vpop.eup %4124 }
 0x9e5   : > { %v1567_v58 = vsel %vm1227_vm10, %v4125_v56, 0.0  ;;  %v2172_v4 = vpop.permute.xlu1 %2171 }
 0x9e6   : > { %1568 = vadd.xlane.f32.xlu0 %v1567_v58 }
 0x9fc   : > { %1572 = vrot.lane.b32.xlu0 %v5195_v52, %s4564_s8 }
 0xa00   : > { %2007 = vrot.lane.b32.xlu0 %v5212_v7, %s4563_s15 }
 0xa04   : > { %2173 = vrot.lane.b32.xlu0 %v5212_v7, %s4564_s8 }
 0xa08   : > { %2339 = vrot.lane.b32.xlu0 %v5212_v7, %s4565_s16  ;;  %v2338_v7 = vpop.permute.xlu1 %2337 }
 0xa1a   : > { %v1917_v8 = vpop.xlane.xlu1 %1916 }
 0xa1b   : > { %v1918_v11 = vsub.f32 %v5231_v13, %v1917_v8 }
 0xa1d   : > { %v1919_v18 = vmul.f32 1.442695, %v1918_v11  ;;  %v4065_v11 = vld [vmem:[%s5108_s21 + $0x8] sm:$0xff]  }
 0xa73   : > { %v1569_v60 = vpop.xlane.xlu0 %1568 }
 0xa74   : > { %4126 = vrcp.f32 %v1569_v60 }
 0xa75   : > { %4128 = vpow2.f32 %v1919_v18 }
 0xa77   : > { %v1573_v62 = vpop.permute.xlu0 %1572 }
 0xa78   : > { %3708 = vmatpush3.msk.msra.mxu1 %vm1243_vm9, %v1573_v62 }
 0xa79   : > { %3712 = vmatprep.subr.mxu1 %v4560_v53 }
 0xa7b   : > { %v2008_v0 = vpop.permute.xlu0 %2007 }
 0xa7c   : > { %3733 = vmatpush3.xpose.msk.msra.mxu0 %vm1150_vm7, %v2008_v0 }
 0xa7d   : > { %3742 = vmatprep.subr.mxu0 %v4560_v53 }
 0xa7e   : > { %v4127_v1 = vpop.eup %4126 }
 0xa7f   : > { %v1571_v2 = vmul.f32 %v4127_v1, %v4125_v56  ;;  %v2174_v3 = vpop.permute.xlu0 %2173  ;;  %3735 = vmatmul.mubr.msk.f32.vlgmr.msra.gmra.mrb[6].mxu0 %vm1150_vm7, %v2006_v63  ;;  %v4129_v27 = vpop.eup %4128 }
 0xa80   : > { %3743 = vmatpush3.xpose.msk.msra.mxu0 %vm1150_vm7, %v2174_v3  ;;  %3744 = vmatprep.mubr.msk.f32.mxu0 %vm4562_vm6, %v4560_v53  ;;  %v1921_v28 = vsel %vm1227_vm10, %v4129_v27, 0.0 }
 0xa81   : > { %3710 = vmatmul.mubr.msk.f32.vlgmr.msra.gmra.mrb[14].mxu1 %vm1239_vm11, %v1571_v2  ;;  %3752 = vmatprep.subr.mxu0 %v4560_v53 }
 0xa82   : > { %3713 = vmatpush3.xpose.msk.msra.mxu1 %vm1150_vm7, %v1652_v59  ;;  %3714 = vmatprep.mubr.msk.f32.mxu1 %vm4562_vm6, %v4560_v53 }
 0xa83   : > { %v2340_v5 = vpop.permute.xlu0 %2339  ;;  %3745 = vmatmul.mubr.msk.f32.vlgmr.msra.gmra.mrb[8].mxu0 %vm1150_vm7, %v2172_v4  ;;  %3717 = vmatprep.subr.mxu1 %v4560_v53 }
 0xa84   : > { %3753 = vmatpush3.xpose.msk.msra.mxu0 %vm1150_vm7, %v2340_v5  ;;  %3754 = vmatprep.mubr.msk.f32.mxu0 %vm4562_vm6, %v4560_v53 }
 0xa85   : > { %3715 = vmatmul.mubr.msk.f32.vlgmr.msra.gmra.mrb[16].mxu1 %vm1150_vm7, %v1650_v61  ;;  %3762 = vmatprep.subr.bf16.mxu0 %v4560_v53 }
 0xa86   : > { %3719 = vmatprep.mubr.msk.f32.mxu1 %vm4562_vm6, %v4560_v53 }
 0xa87   : > { %3755 = vmatmul.mubr.msk.f32.vlgmr.msra.gmra.mrb[10].mxu0 %vm1150_vm7, %v2338_v7 }
 0xa88   : > { %3778 = vmatprep.mubr.msk.bf16.mxu0 %vm4562_vm6, %v4560_v53 }
 0xb52   : > { %v2079_v9 = vpop.f32.mrb[6].mxu0 }
 0xb53   : > { %v3736_v10 = vpop.f32.mrb[7].mxu0  ;;  %v2083_v24 = vsel %vm1227_vm10, %v2079_v9, -inf }
 0xb54   : > { %v5316_v12 = vpop.f32.mrb[14].mxu1  ;;  %v4064_v10 = vld [vmem:[%s5108_s21] sm:$0xff]  }
 0xb55   : > { %v3711_v14 = vpop.f32.mrb[15].mxu1  ;;  %3763 = vmatpush3.bf16.msra.mxu0 %v4064_v10 }
 0xb56   : > { %v2245_v15 = vpop.f32.mrb[8].mxu0  ;;  %3764 = vmatprep.subr.bf16.mxu0 %v4560_v53  ;;  %v4066_v14 = vld [vmem:[%s5108_s21 + $0x10] sm:$0xff]  }
 0xb57   : > { %v3746_v17 = vpop.f32.mrb[9].mxu0  ;;  %v2249_v25 = vsel %vm1227_vm10, %v2245_v15, -inf }
 0xb58   : > { %v1723_v19 = vpop.f32.mrb[16].mxu1  ;;  %v4068_v17 = vld [vmem:[%s5108_s21 + $0x20] sm:$0xff]  }
 0xb59   : > { %v3716_v20 = vpop.f32.mrb[17].mxu1  ;;  %v1727_v21 = vsel %vm1227_vm10, %v1723_v19, -inf  ;;  %3765 = vmatpush3.bf16.msra.mxu0 %v4065_v11 }
 0xb5a   : > { %v2411_v22 = vpop.f32.mrb[10].mxu0  ;;  %1728 = vmax.xlane.f32.xlu0 %v1727_v21  ;;  %3766 = vmatprep.subr.bf16.mxu0 %v4560_v53  ;;  %v4070_v20 = vld [vmem:[%s5108_s21 + $0x30] sm:$0xff]  }
 0xb5b   : > { %v3756_v23 = vpop.f32.mrb[11].mxu0  ;;  %v2415_v13 = vsel %vm1227_vm10, %v2411_v22, -inf }
 0xb5c   : > { %v4071_v23 = vld [vmem:[%s5108_s21 + $0x38] sm:$0xff]  }
 0xb5d   : > { %3767 = vmatpush3.bf16.msra.mxu0 %v4066_v14 }
 0xb5e   : > { %2084 = vmax.xlane.f32.xlu0 %v2083_v24  ;;  %3768 = vmatprep.subr.bf16.mxu0 %v4560_v53 }
 0xb62   : > { %2250 = vmax.xlane.f32.xlu0 %v2249_v25 }
 0xb66   : > { %2416 = vmax.xlane.f32.xlu0 %v2415_v13 }
 0xb6a   : > { %1922 = vadd.xlane.f32.xlu0 %v1921_v28 }
 0xbe7   : > { %v1729_v30 = vpop.xlane.xlu0 %1728 }
 0xbe8   : > { %v1730_v37 = vsub.f32 %v1723_v19, %v1729_v30 }
 0xbea   : > { %v1731_v41 = vmul.f32 1.442695, %v1730_v37 }
 0xbeb   : > { %v2085_v32 = vpop.xlane.xlu0 %2084 }
 0xbec   : > { %v2086_v33 = vsub.f32 %v2079_v9, %v2085_v32 }
 0xbee   : > { %v2087_v34 = vmul.f32 1.442695, %v2086_v33 }
 0xbef   : > { %v2251_v35 = vpop.xlane.xlu0 %2250 }
 0xbf0   : > { %4130 = vpow2.f32 %v2087_v34  ;;  %v2252_v36 = vsub.f32 %v2245_v15, %v2251_v35  ;;  %v4067_v15 = vld [vmem:[%s5108_s21 + $0x18] sm:$0xff]  }
 0xbf1   : > { %3769 = vmatpush3.bf16.msra.mxu0 %v4067_v15  ;;  %v4080_v15 = vld [vmem:[%s5095_s11 + $0x24] ss:$8 sps:$4 sm:$0xff]  }
 0xbf2   : > { %v2253_v38 = vmul.f32 1.442695, %v2252_v36  ;;  %3770 = vmatprep.subr.bf16.mxu0 %v4560_v53 }
 0xbf3   : > { %v2417_v39 = vpop.xlane.xlu0 %2416 }
 0xbf4   : > { %4132 = vpow2.f32 %v2253_v38  ;;  %v2418_v40 = vsub.f32 %v2411_v22, %v2417_v39 }
 0xbf5   : > { %3771 = vmatpush3.bf16.msra.mxu0 %v4068_v17  ;;  %v4078_v17 = vld [vmem:[%s5095_s11 + $0x20] ss:$8 sps:$4 sm:$0xff]  }
 0xbf6   : > { %v2419_v42 = vmul.f32 1.442695, %v2418_v40  ;;  %3772 = vmatprep.subr.bf16.mxu0 %v4560_v53 }
 0xbf7   : > { %v1923_v57 = vpop.xlane.xlu0 %1922 }
 0xbf8   : > { %4134 = vpow2.f32 %v2419_v42 }
 0xbf9   : > { %4136 = vpow2.f32 %v1731_v41 }
 0xbfa   : > { %v4131_v43 = vpop.eup %4130 }
 0xbfb   : > { %v2089_v47 = vsel %vm1227_vm10, %v4131_v43, 0.0 }
 0xbfc   : > { %2090 = vadd.xlane.f32.xlu1 %v2089_v47 }
 0xbfe   : > { %v4133_v48 = vpop.eup %4132 }
 0xbff   : > { %v2255_v49 = vsel %vm1227_vm10, %v4133_v48, 0.0 }
 0xc00   : > { %2256 = vadd.xlane.f32.xlu0 %v2255_v49 }
 0xc02   : > { %v4135_v50 = vpop.eup %4134 }
 0xc03   : > { %v2421_v51 = vsel %vm1227_vm10, %v4135_v50, 0.0  ;;  %v4137_v54 = vpop.eup %4136 }
 0xc04   : > { %2422 = vadd.xlane.f32.xlu1 %v2421_v51  ;;  %v1733_v55 = vsel %vm1227_vm10, %v4137_v54, 0.0  ;;  %v2632_v51 = vsub.s32 4, %v5168_v29 }
 0xc08   : > { %1734 = vadd.xlane.f32.xlu1 %v1733_v55 }
 0xc16   : > { %1738 = vrot.lane.b32.xlu0 %v5195_v52, %s4565_s16 }
 0xc19   : > { %2094 = vrot.lane.b32.xlu1 %v5209_v6, %s4563_s15 }
 0xc1d   : > { %2260 = vrot.lane.b32.xlu1 %v5209_v6, %s4564_s8 }
 0xc21   : > { %2426 = vrot.lane.b32.xlu1 %v5209_v6, %s4565_s16 }
 0xc89   : > { %v2091_v56 = vpop.xlane.xlu1 %2090 }
 0xc8d   : > { %v2257_v58 = vpop.xlane.xlu0 %2256 }
 0xc91   : > { %v2423_v59 = vpop.xlane.xlu1 %2422  ;;  %v1739_v60 = vpop.permute.xlu0 %1738 }
 0xc92   : > { %3718 = vmatpush3.msk.msra.mxu1 %vm1243_vm9, %v1739_v60  ;;  %v4161_v60 = vld [vmem:[#allocation2 + $0x8] sm:$0xf] }
 0xc93   : > { %3727 = vmatprep.subr.mxu1 %v4560_v53 }
 0xc95   : > { %v1735_v61 = vpop.xlane.xlu1 %1734 }
 0xc96   : > { %4138 = vrcp.f32 %v1735_v61 }
 0xc97   : > { %4140 = vrcp.f32 %v1923_v57  ;;  %v4160_v57 = vld [vmem:[#allocation2] sm:$0xff] }
 0xc98   : > { %4142 = vrcp.f32 %v2091_v56 }
 0xc99   : > { %4144 = vrcp.f32 %v2257_v58  ;;  %v2095_v0 = vpop.permute.xlu1 %2094 }
 0xc9a   : > { %4146 = vrcp.f32 %v2423_v59 }
 0xc9d   : > { %v2261_v4 = vpop.permute.xlu1 %2260 }
 0xca0   : > { %v4139_v52 = vpop.eup %4138 }
 0xca1   : > { %v1737_v62 = vmul.f32 %v4139_v52, %v4137_v54  ;;  %v4141_v63 = vpop.eup %4140  ;;  %v2427_v8 = vpop.permute.xlu1 %2426  ;;  %v2633_v54 = vrot.slane %v5172_v31, %v2632_v51 }
 0xca2   : > { %v1925_v1 = vmul.f32 %v4141_v63, %v4129_v27  ;;  %v4143_v2 = vpop.eup %4142 }
 0xca3   : > { %3720 = vmatmul.mubr.msk.f32.vlgmr.msra.gmra.mrb[18].mxu1 %vm1239_vm11, %v1737_v62  ;;  %v2093_v3 = vmul.f32 %v4143_v2, %v4131_v43  ;;  %v4077_v2 = vld [vmem:[%s5095_s11 + $0x14] ss:$8 sps:$4 sm:$0xff]  }
 0xca4   : > { %3728 = vmatpush3.msk.msra.mxu1 %vm1243_vm9, %v5209_v6  ;;  %3729 = vmatprep.mubr.msk.f32.mxu1 %vm4562_vm6, %v4560_v53  ;;  %v4145_v6 = vpop.eup %4144 }
 0xca5   : > { %3737 = vmatprep.subr.mxu1 %v4560_v53  ;;  %v2259_v5 = vmul.f32 %v4145_v6, %v4133_v48  ;;  %v4147_v7 = vpop.eup %4146 }
 0xca6   : > { %v2425_v9 = vmul.f32 %v4147_v7, %v4135_v50 }
 0xca7   : > { %3730 = vmatmul.mubr.msk.f32.vlgmr.msra.gmra.mrb[20].mxu1 %vm1239_vm11, %v1925_v1  ;;  %v4074_v1 = vld [vmem:[%s5095_s11 + $0x4] ss:$8 sps:$4 sm:$0xff]  }
 0xca8   : > { %3738 = vmatpush3.msk.msra.mxu1 %vm1243_vm9, %v2095_v0  ;;  %3739 = vmatprep.mubr.msk.f32.mxu1 %vm4562_vm6, %v4560_v53  ;;  %v4072_v0 = vld [vmem:[%s5095_s11] ss:$8 sps:$4 sm:$0xff]  }
 0xca9   : > { %3747 = vmatprep.subr.mxu1 %v4560_v53 }
 0xcab   : > { %3740 = vmatmul.mubr.msk.f32.vlgmr.msra.gmra.mrb[22].mxu1 %vm1239_vm11, %v2093_v3  ;;  %v4075_v3 = vld [vmem:[%s5095_s11 + $0x10] ss:$8 sps:$4 sm:$0xff]  }
 0xcac   : > { %3748 = vmatpush3.msk.msra.mxu1 %vm1243_vm9, %v2261_v4  ;;  %3749 = vmatprep.mubr.msk.f32.mxu1 %vm4562_vm6, %v4560_v53 }
 0xcad   : > { %3757 = vmatprep.subr.mxu1 %v4560_v53 }
 0xcaf   : > { %3750 = vmatmul.mubr.msk.f32.vlgmr.msra.gmra.mrb[24].mxu1 %vm1239_vm11, %v2259_v5 }
 0xcb0   : > { %3758 = vmatpush3.msk.msra.mxu1 %vm1243_vm9, %v2427_v8  ;;  %3759 = vmatprep.mubr.msk.f32.mxu1 %vm4562_vm6, %v4560_v53 }
 0xcb1   : > { %2777 = vmatprep.subr.bf16.mxu1 %v4074_v1  ;;  %v4111_v1 = vld [vmem:[%s5097_s4 + $0x38] sm:$0xff]  }
 0xcb3   : > { %3760 = vmatmul.mubr.msk.f32.vlgmr.msra.gmra.mrb[26].mxu1 %vm1239_vm11, %v2425_v9 }
 0xcb4   : > { %2809 = vmatprep.mubr.bf16.mxu1 %v4561_v16  ;;  %v4069_v16 = vld [vmem:[%s5108_s21 + $0x28] sm:$0xff]   ;;  %2778 = vmatpush1.bf16.msra.mxu1 %v4072_v0  ;;  %v4110_v0 = vld [vmem:[%s5097_s4 + $0x78] sm:$0xff]  }
 0xcb5   : > { %3773 = vmatpush3.bf16.msra.mxu0 %v4069_v16  ;;  %2779 = vmatprep.subr.bf16.mxu1 %v4077_v2  ;;  %v4083_v16 = vld [vmem:[%s5095_s11 + $0x34] ss:$8 sps:$4 sm:$0xff]   ;;  %v2691_v2 = vsub.s32 7, %v5168_v29 }
 0xcb6   : > { %3774 = vmatprep.subr.bf16.mxu0 %v4560_v53 }
 0xcb8   : > { %2780 = vmatpush1.bf16.msra.mxu1 %v4075_v3  ;;  %v2692_v3 = vrot.slane %v5172_v31, %v2691_v2 }
 0xcb9   : > { %3775 = vmatpush3.bf16.msra.mxu0 %v4070_v20  ;;  %2781 = vmatprep.subr.bf16.mxu1 %v4080_v15  ;;  %v4084_v20 = vld [vmem:[%s5095_s11 + $0x40] ss:$8 sps:$4 sm:$0xff]  }
 0xcba   : > { %3776 = vmatprep.subr.bf16.mxu0 %v4560_v53 }
 0xcbc   : > { %2782 = vmatpush1.bf16.msra.mxu1 %v4078_v17 }
 0xcbd   : > { %3777 = vmatpush3.bf16.msra.mxu0 %v4071_v23  ;;  %2783 = vmatprep.subr.bf16.mxu1 %v4083_v16  ;;  %v4092_v23 = vld [vmem:[%s5095_s11 + $0x64] ss:$8 sps:$4 sm:$0xff]  }
 0xd76   : > { %v1811_v18 = vpop.f32.mrb[18].mxu1 }
 0xd77   : > { %v3721_v19 = vpop.f32.mrb[19].mxu1 }
 0xd78   : > { %v4086_v19 = vld [vmem:[%s5095_s11 + $0x44] ss:$8 sps:$4 sm:$0xff]  }
 0xd7a   : > { %v2001_v21 = vpop.f32.mrb[20].mxu1 }
 0xd7b   : > { %v3731_v22 = vpop.f32.mrb[21].mxu1 }
 0xd7c   : > { %v4087_v22 = vld [vmem:[%s5095_s11 + $0x50] ss:$8 sps:$4 sm:$0xff]  }
 0xd7e   : > { %v2167_v24 = vpop.f32.mrb[22].mxu1 }
 0xd7f   : > { %v4022_v25 = vpack.i.bf16 %v5266_v45, %v2167_v24  ;;  %v3741_v13 = vpop.f32.mrb[23].mxu1  ;;  %v4090_v24 = vld [vmem:[%s5095_s11 + $0x60] ss:$8 sps:$4 sm:$0xff]  }
 0xd80   : > { %v4093_v13 = vld [vmem:[%s5095_s11 + $0x70] ss:$8 sps:$4 sm:$0xff]  }
 0xd81   : > { %4023 = vrot.lane.b32.xlu0 %v4022_v25, %s4565_s16  ;;  %v4095_v25 = vld [vmem:[%s5095_s11 + $0x74] ss:$8 sps:$4 sm:$0xff]  }
 0xd82   : > { %v2333_v27 = vpop.f32.mrb[24].mxu1 }
 0xd83   : > { %v4027_v28 = vpack.i.bf16 %v5316_v12, %v2333_v27  ;;  %v3751_v30 = vpop.f32.mrb[25].mxu1  ;;  %v4096_v27 = vld [vmem:[%s5097_s4 + $0x40] sm:$0xff]  }
 0xd84   : > { %v4098_v30 = vld [vmem:[%s5097_s4 + $0x48] sm:$0xff]   ;;  %3611 = vmatprep.subr.bf16.mxu0 %v4096_v27 }
 0xd85   : > { %4028 = vrot.lane.b32.xlu1 %v4027_v28, %s4564_s8  ;;  %v4097_v28 = vld [vmem:[%s5097_s4] sm:$0xff]   ;;  %s5686_s8 = sld [smem:[#allocation43_spill]] (!%p3544_p11) }
 0xd86   : > { %v2499_v32 = vpop.f32.mrb[26].mxu1 }
 0xd87   : > { %2512 = vrot.lane.b32.xlu0 %v2499_v32, %s4563_s15  ;;  %v3761_v33 = vpop.f32.mrb[27].mxu1  ;;  %v4099_v32 = vld [vmem:[%s5097_s4 + $0x8] sm:$0xff]  }
 0xd89   : > { %1824 = vrot.lane.b32.xlu1 %v1811_v18, %s4563_s15  ;;  %v4081_v18 = vld [vmem:[%s5095_s11 + $0x30] ss:$8 sps:$4 sm:$0xff]  }
 0xd8a   : > { %2784 = vmatpush1.bf16.msra.mxu1 %v4081_v18 }
 0xd8b   : > { %2785 = vmatprep.subr.bf16.mxu1 %v4086_v19 }
 0xd8e   : > { %2786 = vmatpush1.bf16.msra.mxu1 %v4084_v20 }
 0xdf3   : > { %v4024_v53 = vpop.permute.xlu0 %4023 }
 0xdf4   : > { %v4026_v34 = vunpack.i.h.bf16 %v4024_v53  ;;  %v4025_v35 = vunpack.i.l.bf16 %v4024_v53 }
 0xdf6   : > { %v2515_v38 = vsel %vm1150_vm7, %v2001_v21, %v4025_v35  ;;  %v1827_v39 = vsel %vm1150_vm7, %v5246_v26, %v4026_v34  ;;  %v4089_v21 = vld [vmem:[%s5095_s11 + $0x54] ss:$8 sps:$4 sm:$0xff]  }
 0xdf7   : > { %v4029_v45 = vpop.permute.xlu1 %4028  ;;  %2787 = vmatprep.subr.bf16.mxu1 %v4089_v21 }
 0xdf8   : > { %v4031_v36 = vunpack.i.h.bf16 %v4029_v45  ;;  %v4030_v37 = vunpack.i.l.bf16 %v4029_v45  ;;  %2788 = vmatpush1.bf16.msra.mxu1 %v4087_v22 }
 0xdf9   : > { %v2513_v12 = vpop.permute.xlu0 %2512  ;;  %2789 = vmatprep.subr.bf16.mxu1 %v4092_v23 }
 0xdfa   : > { %v2516_v40 = vsel %vm1828_vm12, %v2515_v38, %v4030_v37  ;;  %v1829_v41 = vsel %vm1828_vm12, %v1827_v39, %v4031_v36  ;;  %v2662_v37 = vsub.s32 2, %v5168_v29 }
 0xdfb   : > { %v2517_v42 = vsel %vm1830_vm13, %v2516_v40, %v2513_v12  ;;  %v1825_v43 = vpop.permute.xlu1 %1824  ;;  %v2668_v40 = vsub.s32 3, %v5168_v29 }
 0xdfc   : > { %v2519_v47 = vrot.slane %v2517_v42, 2  ;;  %v1831_v48 = vsel %vm1830_vm13, %v1829_v41, %v1825_v43  ;;  %2790 = vmatpush1.bf16.msra.mxu1 %v4090_v24  ;;  %v2663_v39 = vrot.slane %v5172_v31, %v2662_v37 }
 0xdfd   : > { %2791 = vmatprep.subr.bf16.mxu1 %v4095_v25 }
 0xdfe   : > { %v2521_v49 = vsel %vm1243_vm9, %v1831_v48, %v2519_v47 }
 0xdff   : > { %v2522_v50 = vpack.c.bf16 %v2519_v47, %v2521_v49  ;;  %v2669_v47 = vrot.slane %v5172_v31, %v2668_v40 }
 0xe00   : > { %2792 = vmatpush1.bf16.msra.mxu1 %v4093_v13 }
 0xe01   : > { %3779 = vmatmul.mubr.bf16.vlgmr.msra.gmra.mrb[12].mxu0 %v2522_v50 }
 0xe02   : > { %3612 = vmatpush3.bf16.msra.mxu0 %v4097_v28 }
 0xe03   : > { %3613 = vmatprep.subr.bf16.mxu0 %v4098_v30 }
 0xe06   : > { %3614 = vmatpush3.bf16.msra.mxu0 %v4099_v32 }
 0xed4   : > { %v2621_v55 = vpop.f32.mrb[12].mxu0 }
 0xed5   : > { %v2628_v26 = vadd.f32 %v4160_v57, %v2621_v55  ;;  %v3780_v56 = vpop.f32.mrb[13].mxu0  ;;  %v4101_v55 = vld [vmem:[%s5097_s4 + $0x10] sm:$0xff]   ;;  %v4102_v57 = vld [vmem:[%s5097_s4 + $0x58] sm:$0xff]  }
 0xed6   : > { %v2624_v58 = vpop.f32.mrb[14].mxu0  ;;  %v4104_v56 = vld [vmem:[%s5097_s4 + $0x60] sm:$0xff]  }
 0xed7   : > { %v5386_v59 = vadd.f32 %v2633_v54, %v2628_v26  ;;  %v2629_v61 = vadd.f32 %v4161_v60, %v2624_v58  ;;  %v3781_v52 = vpop.f32.mrb[15].mxu0  ;;  %v4103_v26 = vld [vmem:[%s5097_s4 + $0x18] sm:$0xff]   ;;  %v4105_v58 = vld [vmem:[%s5097_s4 + $0x20] sm:$0xff]   ;;  %v4106_v60 = vld [vmem:[%s5097_s4 + $0x68] sm:$0xff]  }
 0xed8   : > { %v4108_v52 = vld [vmem:[%s5097_s4 + $0x70] sm:$0xff]  }
 0xed9   : > { %v5388_v62 = vadd.f32 %v2633_v54, %v2629_v61  ;;  %2636 = vadd.xlane.f32.xlu1 %v5386_v59  ;;  %v4100_v54 = vld [vmem:[%s5097_s4 + $0x50] sm:$0xff]   ;;  %v4107_v61 = vld [vmem:[%s5097_s4 + $0x28] sm:$0xff]  }
 0xeda   : > { %3615 = vmatprep.subr.bf16.mxu0 %v4100_v54  ;;  %v3052_v54 = vld [vmem:[%s5684_s24] sm:$0xff] (!%p3544_p11) }
 0xedb   : > { %v2638_v63 = vsel %vm857_vm5, %v5388_v62, 0.0  ;;  %3616 = vmatpush3.bf16.msra.mxu0 %v4101_v55  ;;  %v4566_v55 = vmov (!%p3544_p11), 0.0|0.0  }
 0xedc   : > { %2639 = vadd.xlane.f32.xlu0 %v2638_v63  ;;  %3617 = vmatprep.subr.bf16.mxu0 %v4102_v57  ;;  %v4109_v63 = vld [vmem:[%s5097_s4 + $0x30] sm:$0xff]   ;;  %s5685_s4 = smov (!%p3544_p11), %s5684_s24 }
 0xedf   : > { %3618 = vmatpush3.bf16.msra.mxu0 %v4103_v26  ;;  %v3055_v26 = vld [vmem:[%s5685_s4 + $0x18] sm:$0xff] (!%p3544_p11) }
 0xee0   : > { %3619 = vmatprep.subr.bf16.mxu0 %v4104_v56 }
 0xee3   : > { %3620 = vmatpush3.bf16.msra.mxu0 %v4105_v58  ;;  %v3056_v58 = vld [vmem:[%s5685_s4 + $0x20] sm:$0xff] (!%p3544_p11) }
 0xee4   : > { %3621 = vmatprep.subr.bf16.mxu0 %v4106_v60  ;;  %v3057_v60 = vld [vmem:[%s5685_s4 + $0x28] sm:$0xff] (!%p3544_p11) }
 0xee7   : > { %3622 = vmatpush3.bf16.msra.mxu0 %v4107_v61  ;;  %v3824_v61 = vpack.c.bf16 (!%p3544_p11), %v3057_v60, %v3056_v58 }
 0xee8   : > { %3623 = vmatprep.subr.bf16.mxu0 %v4108_v52 }
 0xeeb   : > { %3624 = vmatpush3.bf16.msra.mxu0 %v4109_v63 }
 0xeec   : > { %3625 = vmatprep.subr.bf16.mxu0 %v4110_v0 }
 0xeef   : > { %3626 = vmatpush3.bf16.msra.mxu0 %v4111_v1 }
 0xef0   : > { %3817 = vmatprep.subr.bf16.mxu0 (!%p3544_p11), %v4566_v55 }
 0xf66   : > { %v2637_v4 = vpop.xlane.xlu1 %2636 }
 0xf67   : > { %v2641_v6 = vmul.f32 0.0078125, %v2637_v4  ;;  %v2696_v4 = vrot.slane %v5188_v46, %v2691_v2 }
 0xf69   : > { %v2643_v5 = vsub.f32 %v5386_v59, %v2641_v6  ;;  %v2640_v7 = vpop.xlane.xlu0 %2639 }
 0xf6a   : > { %v2642_v8 = vmul.f32 0.0078125, %v2640_v7 }
 0xf6b   : > { %v2645_v9 = vmul.f32 %v2643_v5, %v2643_v5 }
 0xf6c   : > { %v2644_v10 = vsub.f32 %v5388_v62, %v2642_v8 }
 0xf6d   : > { %2647 = vadd.xlane.f32.xlu0 %v2645_v9 }
 0xf6e   : > { %v2646_v11 = vmul.f32 %v2644_v10, %v2644_v10 }
 0xf70   : > { %v2649_v14 = vsel %vm857_vm5, %v2646_v11, 0.0 }
 0xf71   : > { %2650 = vadd.xlane.f32.xlu0 %v2649_v14 }
 0xffa   : > { %v2648_v33 = vpop.xlane.xlu0 %2647 }
 0xffb   : > { %v2652_v53 = vmul.f32 0.0078125, %v2648_v33 }
 0xffd   : > { %v2654_v34 = vadd.f32 1e-05, %v2652_v53 }
 0xffe   : > { %v2651_v35 = vpop.xlane.xlu0 %2650 }
 0xfff   : > { %4148 = vrsqrt.f32 %v2654_v34  ;;  %v2653_v45 = vmul.f32 0.0078125, %v2651_v35 }
0x1001   : > { %v2655_v36 = vadd.f32 1e-05, %v2653_v45 }
0x1003   : > { %4150 = vrsqrt.f32 %v2655_v36  ;;  %v2876_v36 = vsub.s32 5, %v5168_v29 }
0x1009   : > { %v4149_v38 = vpop.eup %4148 }
0x100a   : > { %v2658_v12 = vmul.f32 %v4149_v38, %v2643_v5  ;;  %v2877_v38 = vrot.slane %v5172_v31, %v2876_v36 }
0x100c   : > { %v2664_v43 = vmul.f32 %v2663_v39, %v2658_v12 }
0x100d   : > { %v4151_v41 = vpop.eup %4150 }
0x100e   : > { %v2659_v42 = vmul.f32 %v4151_v41, %v2644_v10  ;;  %v2670_v49 = vadd.f32 %v2669_v47, %v2664_v43 }
0x1010   : > { %v2665_v48 = vmul.f32 %v2663_v39, %v2659_v42 }
0x1012   : > { %v2671_v50 = vadd.f32 %v2669_v47, %v2665_v48 }
0x1014   : > { %v2672_v51 = vpack.c.bf16 %v2671_v50, %v2670_v49 }
0x1016   : > { %2810 = vmatmul.mubr.bf16.vlgmr.msra.gmra.mrb[28].mxu1 %v2672_v51 }
0x10e9   : > { %v2811_v6 = vpop.f32.mrb[28].mxu1 }
0x10ea   : > { %v2812_v5 = vadd.f32 %v2811_v6, %v2692_v3  ;;  %v2813_v7 = vpop.f32.mrb[29].mxu1 }
0x10eb   : > { %v2814_v8 = vadd.f32 %v2813_v7, %v2696_v4  ;;  %v2815_v9 = vpop.f32.mrb[30].mxu1  ;;  %v3061_v7 = vld [vmem:[%s5685_s4 + $0x48] sm:$0xff] (!%p3544_p11) }
0x10ec   : > { %v2824_v10 = vmul.f32 0.70710677, %v2812_v5  ;;  %v2816_v11 = vadd.f32 %v2815_v9, %v2692_v3  ;;  %v2817_v14 = vpop.f32.mrb[31].mxu1  ;;  %v2820_v24 = vmul.f32 0.5, %v2812_v5  ;;  %v3058_v3 = vld [vmem:[%s5685_s4 + $0x30] sm:$0xff] (!%p3544_p11)  ;;  %v3060_v5 = vld [vmem:[%s5685_s4 + $0x40] sm:$0xff] (!%p3544_p11) }
0x10ed   : > { %v2825_v15 = vmul.f32 0.70710677, %v2814_v8  ;;  %v2818_v17 = vadd.f32 %v2817_v14, %v2696_v4  ;;  %v2821_v27 = vmul.f32 0.5, %v2814_v8  ;;  %v3059_v4 = vld [vmem:[%s5685_s4 + $0x38] sm:$0xff] (!%p3544_p11)  ;;  %v3830_v8 = vpack.c.bf16 (!%p3544_p11), %v3061_v7, %v3060_v5  ;;  %v3062_v9 = vld [vmem:[%s5685_s4 + $0x50] sm:$0xff] (!%p3544_p11) }
0x10ee   : > { %4152 = verf.f32 %v2824_v10  ;;  %v2826_v16 = vmul.f32 0.70710677, %v2816_v11  ;;  %v2822_v25 = vmul.f32 0.5, %v2816_v11  ;;  %v3827_v6 = vpack.c.bf16 (!%p3544_p11), %v3059_v4, %v3058_v3  ;;  %v3063_v10 = vld [vmem:[%s5685_s4 + $0x58] sm:$0xff] (!%p3544_p11) }
0x10ef   : > { %4154 = verf.f32 %v2825_v15  ;;  %v2827_v18 = vmul.f32 0.70710677, %v2818_v17  ;;  %v2823_v28 = vmul.f32 0.5, %v2818_v17  ;;  %v4568_v11 = vmov (!%p3544_p11), 0.0   ;;  %v3064_v15 = vld [vmem:[%s5685_s4 + $0x60] sm:$0xff] (!%p3544_p11)  ;;  %v3065_v17 = vld [vmem:[%s5685_s4 + $0x68] sm:$0xff] (!%p3544_p11) }
0x10f0   : > { %4156 = verf.f32 %v2826_v16  ;;  %v3833_v14 = vpack.c.bf16 (!%p3544_p11), %v3063_v10, %v3062_v9  ;;  %v3836_v16 = vpack.c.bf16 (!%p3544_p11), %v3065_v17, %v3064_v15 }
0x10f1   : > { %4158 = verf.f32 %v2827_v18  ;;  %v3066_v18 = vld [vmem:[%s5685_s4 + $0x70] sm:$0xff] (!%p3544_p11) }
0x10f8   : > { %v4153_v19 = vpop.eup %4152 }
0x10f9   : > { %v4155_v20 = vpop.eup %4154  ;;  %v2832_v21 = vadd.f32 1.0, %v4153_v19  ;;  %v3067_v19 = vld [vmem:[%s5685_s4 + $0x78] sm:$0xff] (!%p3544_p11) }
0x10fa   : > { %v4157_v46 = vpop.eup %4156  ;;  %v2833_v22 = vadd.f32 1.0, %v4155_v20  ;;  %v3839_v20 = vpack.c.bf16 (!%p3544_p11), %v3067_v19, %v3066_v18 }
0x10fb   : > { %v4159_v23 = vpop.eup %4158  ;;  %v2834_v13 = vadd.f32 1.0, %v4157_v46  ;;  %v2836_v32 = vmul.f32 %v2832_v21, %v2820_v24 }
0x10fc   : > { %v2835_v30 = vadd.f32 1.0, %v4159_v23  ;;  %v2837_v53 = vmul.f32 %v2833_v22, %v2821_v27  ;;  %v3023_v23 = vld [vmem:[#allocation11] sm:$0xff] (!%p3544_p11) }
0x10fd   : > { %v2838_v33 = vmul.f32 %v2834_v13, %v2822_v25  ;;  %v3045_v24 = vrot.slane (!%p3544_p11), %v3023_v23, %v2876_v36  ;;  %v3050_v27 = vrot.slane (!%p3544_p11), %v3023_v23, %v5184_v44 }
0x10fe   : > { %v2839_v34 = vmul.f32 %v2835_v30, %v2823_v28 }
0x10ff   : > { %v2840_v35 = vpack.c.bf16 %v2838_v33, %v2836_v32  ;;  %v4569_v32 = vmov (!%p3544_p11), 1966171168  }
0x1100   : > { %v2841_v45 = vpack.c.bf16 %v2839_v34, %v2837_v53  ;;  %v3147_v33 = vunpack.c.l.s4 (!%p3544_p11), %v4569_v32  ;;  %v3545_v34 = vld [vmem:[%s5686_s8] ss:$0 sm:$0xff] (!%p3544_p11) }
0x1102   : > { %3006 = vmatprep.mubr.bf16.mxu0 %v2841_v45  ;;  %v3148_v53 = vunpack.c.0.s8 (!%p3544_p11), %v3147_v33 }
0x1103   : > { %3007 = vmatmul.mubr.bf16.vlgmr.msra.gmra.mrb[16].mxu0 %v2840_v35 }
0x1104   : > { %3814 = vmatprep.mubr.msk.f32.mxu0 (!%p3544_p11), %vm4567_vm15, %v4568_v11  ;;  %v3151_v35 = vsub.s32 (!%p3544_p11), %v3148_v53, %v5168_v29 }
0x11d6   : > { %v3627_v37 = vpop.f32.mrb[16].mxu0 }
0x11d7   : > { %v3628_v12 = vpop.f32.mrb[17].mxu0 }
0x11d8   : > { %v3629_v39 = vadd.f32 %v3628_v12, %v3627_v37  ;;  %v3630_v40 = vpop.f32.mrb[18].mxu0 }
0x11d9   : > { %v3631_v41 = vpop.f32.mrb[19].mxu0 }
0x11da   : > { %v3009_v42 = vadd.f32 %v3629_v39, %v2877_v38  ;;  %v3632_v43 = vadd.f32 %v3631_v41, %v3630_v40  ;;  %3022 = sbr.rel (%p3544_p11) target bundleno = 5111 (0x13f7), region = 108 }
0x11dc   : > { %v3015_v47 = vadd.f32 %v3009_v42, %v5386_v59  ;;  %v3012_v48 = vadd.f32 %v3632_v43, %v2877_v38  ;;  %v3053_v59 = vld [vmem:[%s5685_s4 + $0x8] sm:$0xff] (!%p3544_p11) }
0x11dd   : > { %v3818_v57 = vpack.c.bf16 (!%p3544_p11), %v3053_v59, %v3052_v54 }
0x11de   : > { %3017 = vst [vmem:[#allocation2] sm:$0xff] %v3015_v47  ;;  %v3016_v49 = vadd.f32 %v3012_v48, %v5388_v62  ;;  %v3025_v50 = vrot.slane (!%p3544_p11), %v3015_v47, 5  ;;  %v3054_v62 = vld [vmem:[%s5685_s4 + $0x10] sm:$0xff] (!%p3544_p11) }
0x11df   : > { %3819 = vmatpush3.bf16.msra.mxu0 (!%p3544_p11), %v3818_v57  ;;  %v3821_v56 = vpack.c.bf16 (!%p3544_p11), %v3055_v26, %v3054_v62 }
0x11e0   : > { %3018 = vst [vmem:[#allocation2 + $0x8] sm:$0xf] %v3016_v49  ;;  %v3028_v51 = vsel (!%p3544_p11), %vm3027_vm14, %v3015_v47, %v3025_v50  ;;  %3820 = vmatprep.subr.bf16.mxu0 (!%p3544_p11), %v4566_v55 }
0x11e1   : > { %v3029_v31 = vsel %vm1833_vm8, %v3028_v51, 0.0 }
0x11e2   : > { %3030 = vadd.xlane.f32.xlu0 %v3029_v31 }
0x11e3   : > { %3822 = vmatpush3.bf16.msra.mxu0 %v3821_v56 }
0x11e4   : > { %3823 = vmatprep.subr.bf16.mxu0 %v4566_v55 }
0x11e7   : > { %3825 = vmatpush3.bf16.msra.mxu0 %v3824_v61 }
0x11e8   : > { %3826 = vmatprep.subr.bf16.mxu0 %v4566_v55 }
0x11eb   : > { %3828 = vmatpush3.bf16.msra.mxu0 %v3827_v6 }
0x11ec   : > { %3829 = vmatprep.subr.bf16.mxu0 %v4566_v55 }
0x11ef   : > { %3831 = vmatpush3.bf16.msra.mxu0 %v3830_v8 }
0x11f0   : > { %3832 = vmatprep.subr.bf16.mxu0 %v4566_v55 }
0x11f3   : > { %3834 = vmatpush3.bf16.msra.mxu0 %v3833_v14 }
0x11f4   : > { %3835 = vmatprep.subr.bf16.mxu0 %v4566_v55 }
0x11f7   : > { %3837 = vmatpush3.bf16.msra.mxu0 %v3836_v16 }
0x11f8   : > { %3838 = vmatprep.subr.bf16.mxu0 %v4566_v55 }
0x11fb   : > { %3840 = vmatpush3.bf16.msra.mxu0 %v3839_v20 }
0x126f   : > { %v3031_v52 = vpop.xlane.xlu0 %3030 }
0x1270   : > { %v3032_v63 = vmul.f32 0.0078125, %v3031_v52 }
0x1272   : > { %v3033_v0 = vsub.f32 %v3028_v51, %v3032_v63 }
0x1274   : > { %v3034_v1 = vmul.f32 %v3033_v0, %v3033_v0 }
0x1276   : > { %v3035_v2 = vsel %vm1833_vm8, %v3034_v1, 0.0 }
0x1277   : > { %3036 = vadd.xlane.f32.xlu0 %v3035_v2 }
0x1304   : > { %v3037_v21 = vpop.xlane.xlu0 %3036 }
0x1305   : > { %v3038_v46 = vmul.f32 0.0078125, %v3037_v21 }
0x1307   : > { %v3039_v22 = vadd.f32 1e-05, %v3038_v46 }
0x1309   : > { %4162 = vrsqrt.f32 %v3039_v22 }
0x1313   : > { %v4163_v25 = vpop.eup %4162 }
0x1314   : > { %v3041_v13 = vmul.f32 %v4163_v25, %v3033_v0 }
0x1316   : > { %v3046_v28 = vmul.f32 %v3045_v24, %v3041_v13 }
0x1318   : > { %v3051_v30 = vadd.f32 %v3050_v27, %v3046_v28 }
0x131a   : > { %3815 = vmatmul.mubr.f32.vlgmr.msra.gmra.mrb[0].mxu0 %v3051_v30 }
0x13ed   : > { %v3141_v45 = vpop.f32.mrb[0].mxu0 }
0x13ee   : > { %v3142_v36 = vadd.f32 %v3545_v34, %v3141_v45  ;;  %v3816_v37 = vpop.f32.mrb[1].mxu0 }
0x13f0   : > { %v3152_v38 = vrot.slane %v3142_v36, %v3151_v35 }
0x13f2   : > { %v3153_v44 = vcombine.high %v3152_v38, %v3152_v38  ;;  %v3160_v12 = vrot.slane %v3152_v38, %v3151_v35 }
0x13f4   : > { %v3167_v39 = vrot.slane %v3153_v44, %v3151_v35  ;;  %3171 = vst.msk [vmem:[%s5115_s2] sm:$0x1] %vm3170_vm0, %v3160_v12 }
0x13f6   : > { %3172 = vst.msk [vmem:[%s5115_s2 + $0x1] sm:$0x1] %vm3170_vm0, %v3167_v39 }
0x13f7 PF: > { %s5687_s16 = sld [smem:[#allocation29_spill]]  ;;  %s5688_s24 = sld [smem:[#allocation47_spill]] }
0x13f8   : > { %s3187_s17 = sshll.u32 %s5115_s2, 4  ;;  %s3174_s0 = scalar_lea.sflag [#allocation5], %s5062_s20  ;;  %s5508_s17 = int_to_ptr.vmem [resolvable:$true] %s3187_s17 }
0x13f9   : > { %s4398_s3 = scalar_lea.vmem %s5508_s17, 32  ;;  %p5690_p0 = scmp.ne.s32.totalorder %s5657_s12, 0 }
0x13fa   : > { %p4399_p12 = scmp.ne.s32.totalorder %s5508_s17, %s4398_s3  ;;  %s4570_s5 = smov [#allocation17]  }
0x13fb   : > { %s4402_s28 = sshll.u32 %s4570_s5, 4  ;;  %s4403_s28 = int_to_ptr.vmem [resolvable:$false] %s4402_s28 }
0x13fc   : > { %p4400_p13 = pnand %p4399_p12, %p5690_p0  ;;  %s4404_s21 = scalar_lea.vmem %s4403_s28, 64 }
0x13fd   : > { %s3556_s19 = sshll.u32 %s5687_s16, 5  ;;  %s5689_s14 = smov %s5688_s24 }
0x13fe   : > { %s5505_s23 = scalar_lea.hbm %s5688_s24, %s3556_s19  ;;  %p4401_p4 = pneg %p4400_p13 }
0x13ff   : > { %p4405_p5 = scmp.lt.s32.totalorder %s5508_s17, %s4403_s28  ;;  %p4406_p1 = scmp.lt.s32.totalorder %s4404_s21, %s4398_s3 }
0x1401   : > { %p4407_p3 = por %p4406_p1, %p4405_p5 }
0x1403   : > { %p4408_p10 = pnand %p4407_p3, %p4401_p4 }
0x1405   : > { %4411 = shalt.err (!%p4408_p10)
}
0x1406   : > { %s4412_s2 = scalar_lea.hbm %s5505_s23, 32  ;;  %s4416_s7 = scalar_lea.hbm %s5689_s14, 64 }
0x1407   : > { %p4413_p9 = scmp.ne.s32.totalorder %s5505_s23, %s4412_s2  ;;  %p4417_p6 = scmp.lt.u32.totalorder %s5505_s23, %s5689_s14 }
0x1408   : > { %p4418_p7 = scmp.lt.u32.totalorder %s4416_s7, %s4412_s2  ;;  %p4420_p12 = scmp.lt.u32.totalorder %s4412_s2, %s5505_s23 }
0x1409   : > { %p4414_p8 = pnand %p4413_p9, %p5690_p0 }
0x140a   : > { %p4419_p11 = por %p4418_p7, %p4417_p6 }
0x140b   : > { %p4415_p2 = pneg %p4414_p8 }
0x140c   : > { %p4421_p13 = por %p4420_p12, %p4419_p11 }
0x140e   : > { %p4422_p4 = pnand %p4421_p13, %p4415_p2 }
0x1410   : > { %4425 = shalt.err (!%p4422_p4)
}
0x1411   : > { %s4571_s8 = smov 16   ;;  %s4572_s16 = smov 1  }
0x1412   : > { %3867 = dma.vmem_to_hbm [thread:$0]  (%p5690_p0), %s5508_s17, 32, %s5505_s23, %s3174_s0, %s4571_s8, %s4571_s8, %s4572_s16  }
0x1413 PF: > { %s5691_s19 = sld [smem:[#allocation27_spill]]  ;;  %s5692_s22 = sld [smem:[#allocation32_spill]] }
0x1414   : > { %p3906_p5 = scmp.ge.s32.totalorder %s4540_s13, 2 }
0x1419   : > { %s3202_s11 = sand.u32 1, %s5691_s19   ;;  %p5693_p1 = scmp.ne.s32.totalorder %s5692_s22, 0 }
0x141a   : > { %s3203_s24 = scalar_lea.sflag [#allocation5], %s3202_s11 }
0x141b   : > { %p3896_p3 = pnand %p3906_p5, %p5693_p1 }
0x141d   : > { %4495 = dma.done.wait (!%p3896_p3), %s3203_s24, 32  }
0x141e   : > { %4497 = vsyncadd (!%p3896_p3), %s3203_s24, 4294967264  ;;  %s38_s13 = sadd.s32 1, %s4540_s13   ;;  %s5694_s21 = sld [smem:[#allocation25_spill]] }
0x141f   : > { %p35_p10 = scmp.ge.s32.totalorder %s38_s13, 6   ;;  %s5695_s22 = sld [smem:[#allocation26_spill]] }
0x1420   : > { %s5696_s23 = sld [smem:[#allocation35_spill]]  ;;  %s5697_s12 = sld [smem:[#allocation37_spill]] }
0x1421   : > { %s5698_s20 = sld [smem:[#allocation34_spill]]  ;;  %s5699_s17 = sld [smem:[#allocation36_spill]] }
0x1422   : > { %s5700_s24 = smov %s4516_s25  ;;  %s5701_s25 = smov %s4520_s26 }
0x1423   : > { %s5703_s27 = smov %s4532_s29  ;;  %s5704_s28 = smov %s4536_s30 }
0x1424   :  { %37 = sbr.rel (!%p35_p10) target bundleno = 27 (0x1b), region = 189 }
0x1426   : > { %s5702_s26 = smov %s5697_s12 }
0x1427   : > { %s5705_s29 = smov %s5698_s20  ;;  %s5706_s30 = smov %s5699_s17 }
0x142b   :  { %3208 = vsyncpa [#allocation4], 1 }
0x142c   :  { %3210 = vsyncpa [#allocation4 + $0x1], 1 }
0x142d   :  { %3211 = vsyncpa [#allocation7], 1 }
0x142e   :  { %3213 = vsyncpa [#allocation7 + $0x1], 1 }
0x142f   :  { %3214 = vsyncpa [#allocation10], 1 }
0x1430   :  { %3215 = vsyncpa [#allocation13], 1 }
0x1431   :  { %3217 = vsyncpa [#allocation13 + $0x1], 1 }
0x1432   :  { %3218 = vsyncpa [#allocation16], 1 }
0x1433   :  { %3220 = vsyncpa [#allocation16 + $0x1], 1 }
0x1434   :  { %3221 = vsyncpa [#allocation5], 1 }
0x1435   :  { %3223 = vsyncpa [#allocation5 + $0x1], 1 }

</bundles_post_ra>
